<compile_context>
chip_gen: v7x
topology: tpu7x:2x2x1
jax: 0.10.0
libtpu: 0.0.40
codegen_flags: <defaults>
</compile_context>

<pallas_src>
import math

import jax
import jax.numpy as jnp
from jax.experimental import pallas as pl
from jax.experimental.pallas import tpu as pltpu


def _round_up(x, m):
    return (x + m - 1) // m * m


def conv_bn_relu(x, weight, bias, gamma, beta, stride=1, padding=0, eps=1e-5,
                 nchw_output=True):
    """x: (N, Cin, H, W); weight: (Cout, Cin, kh, kw).
    Returns (N, Cout, Ho, Wo) f32 (or NHWC (N, Ho, Wo, Cout) if nchw_output=False)."""
    del bias  # cancelled exactly by the training-mode BN mean subtraction
    n, c_in, h, w = x.shape
    c_out, _, kh, kw = weight.shape
    s = stride

    hp, wp = h + 2 * padding, w + 2 * padding
    ho = (hp - kh) // s + 1
    wo = (wp - kw) // s + 1
    hw_slab = ho * wp                # output rows incl. (kw-1) horizontal-halo garbage cols
    cp = _round_up(c_out, 128)       # lane-dense output channels
    # flattened-image rows any tap slice may touch (incl. for the garbage cols)
    rows = s * (hw_slab - 1) + (kh - 1) * wp + kw

    # ---- host-side prep: pure layout, no kh*kw data blow-up -----------------
    x_nhwc = jnp.transpose(x, (0, 2, 3, 1))
    x_pad = jnp.pad(x_nhwc, ((0, 0), (padding, padding), (padding, padding), (0, 0)))
    x_rows = jnp.zeros((n, rows, c_in), jnp.bfloat16)
    x_rows = x_rows.at[:, :hp * wp, :].set(
        x_pad.reshape(n, hp * wp, c_in).astype(jnp.bfloat16))

    w_taps = jnp.transpose(weight, (2, 3, 1, 0)).reshape(kh * kw, c_in, c_out)
    w_p = jnp.zeros((kh * kw, c_in, cp), jnp.bfloat16)
    w_p = w_p.at[:, :, :c_out].set(w_taps.astype(jnp.bfloat16))

    # slab row r -> (r // wp, r % wp); columns r % wp >= wo are halo garbage
    row_valid = ((jnp.arange(hw_slab) % wp) < wo).astype(jnp.float32).reshape(hw_slab, 1)

    cparams = pltpu.CompilerParams(
        dimension_semantics=("parallel",),      # shard images across v7x's 2 TCs
        vmem_limit_bytes=32 * 1024 * 1024,      # safe on v7x; can raise to 64-96MB on v5e/v6e
    )

    inv_cnt = 1.0 / float(ho * wo)

    # ---- Pass 1: in-kernel im2col conv + per-image partial BN statistics ----
    def conv_stats_kernel(x_ref, w_ref, mask_ref, y_ref, stats_ref, acc_ref):
        # x_ref: (1, rows, Cin) bf16 | w_ref: (kh*kw, Cin, Cp) bf16
        # y_ref: (1, hw_slab, Cp) bf16 | stats_ref: (1, 2, Cp) f32
        for dy in range(kh):
            for dx in range(kw):
                off = dy * wp + dx
                idx = pl.ds(off, hw_slab) if s == 1 else pl.ds(off, hw_slab, s)
                xs = x_ref[0, idx, :]                                   # (hw_slab, Cin)
                prod = jnp.dot(xs, w_ref[dy * kw + dx],
                               preferred_element_type=jnp.float32)      # MXU, f32 acc
                if dy == 0 and dx == 0:
                    acc_ref[...] = prod
                else:
                    acc_ref[...] += prod
        acc = acc_ref[...]
        mask = mask_ref[...]                                            # (hw_slab, 1)
        sum_c = jnp.sum(acc * mask, axis=0, keepdims=True)              # (1, Cp)
        mu = sum_c * inv_cnt                                            # per-image mean
        d = (acc - mu) * mask
        ssq_c = jnp.sum(d * d, axis=0, keepdims=True)                   # centered SS
        y_ref[0] = acc.astype(y_ref.dtype)
        stats_ref[0] = jnp.concatenate([sum_c, ssq_c], axis=0)

    y_slab, stats = pl.pallas_call(
        conv_stats_kernel,
        out_shape=(jax.ShapeDtypeStruct((n, hw_slab, cp), jnp.bfloat16),
                   jax.ShapeDtypeStruct((n, 2, cp), jnp.float32)),
        grid=(n,),
        in_specs=[
            pl.BlockSpec((1, rows, c_in), lambda i: (i, 0, 0)),
            pl.BlockSpec((kh * kw, c_in, cp), lambda i: (0, 0, 0)),
            pl.BlockSpec((hw_slab, 1), lambda i: (0, 0)),
        ],
        out_specs=(
            pl.BlockSpec((1, hw_slab, cp), lambda i: (i, 0, 0)),
            pl.BlockSpec((1, 2, cp), lambda i: (i, 0, 0)),
        ),
        scratch_shapes=[pltpu.VMEM((hw_slab, cp), jnp.float32)],
        compiler_params=cparams,
    )(x_rows, w_p, row_valid)

    # ---- tiny cross-image stats combine + BN affine fold (plain JAX) --------
    m_i = float(ho * wo)
    m_total = float(n * ho * wo)
    sums = stats[:, 0, :]                                    # (n, Cp)
    cssq = stats[:, 1, :]                                    # (n, Cp), centered
    mean = jnp.sum(sums, axis=0) / m_total
    mu_i = sums / m_i
    var = (jnp.sum(cssq, axis=0) + m_i * jnp.sum((mu_i - mean) ** 2, axis=0)) / m_total
    var = jnp.maximum(var, 0.0)                              # biased variance (BN train)
    gamma_p = jnp.zeros((cp,), jnp.float32).at[:c_out].set(gamma.astype(jnp.float32))
    beta_p = jnp.zeros((cp,), jnp.float32).at[:c_out].set(beta.astype(jnp.float32))
    scale = gamma_p * jax.lax.rsqrt(var + eps)
    shift = beta_p - mean * scale
    scale_row = scale.reshape(1, cp)
    shift_row = shift.reshape(1, cp)

    # ---- Pass 2: read bf16 conv slab, fused scale*x+shift + ReLU, bf16 out --
    def bn_relu_kernel(y_ref, scale_ref, shift_ref, o_ref):
        yv = y_ref[...].astype(jnp.float32)                  # (1, hw_slab, Cp)
        o = jnp.maximum(yv * scale_ref[...] + shift_ref[...], 0.0)
        o_ref[...] = o.astype(o_ref.dtype)

    out_slab = pl.pallas_call(
        bn_relu_kernel,
        out_shape=jax.ShapeDtypeStruct((n, hw_slab, cp), jnp.bfloat16),
        grid=(n,),
        in_specs=[
            pl.BlockSpec((1, hw_slab, cp), lambda i: (i, 0, 0)),
            pl.BlockSpec((1, cp), lambda i: (0, 0)),
            pl.BlockSpec((1, cp), lambda i: (0, 0)),
        ],
        out_specs=pl.BlockSpec((1, hw_slab, cp), lambda i: (i, 0, 0)),
        compiler_params=cparams,
    )(y_slab, scale_row, shift_row)

    # Strip the horizontal-halo garbage columns and channel padding.
    out = out_slab.reshape(n, ho, wp, cp)[:, :, :wo, :c_out].astype(jnp.float32)
    if nchw_output:
        # Parity with the PyTorch module.  Downstream consumers should keep the
        # lane-dense NHWC layout (nchw_output=False) and skip this HBM round-trip.
        out = jnp.transpose(out, (0, 3, 1, 2))
    return out


def _reference(x, weight, bias, gamma, beta, stride, padding, eps=1e-5):
    """Pure-JAX f32 reference: Conv2d -> BatchNorm2d(train) -> ReLU."""
    y = jax.lax.conv_general_dilated(
        x, weight, window_strides=(stride, stride),
        padding=[(padding, padding), (padding, padding)],
        dimension_numbers=("NCHW", "OIHW", "NCHW"))
    y = y + bias.reshape(1, -1, 1, 1)
    mean = y.mean(axis=(0, 2, 3), keepdims=True)
    var = ((y - mean) ** 2).mean(axis=(0, 2, 3), keepdims=True)
    y = (y - mean) * jax.lax.rsqrt(var + eps)
    y = y * gamma.reshape(1, -1, 1, 1) + beta.reshape(1, -1, 1, 1)
    return jnp.maximum(y, 0.0)


if __name__ == "__main__":
    key = jax.random.PRNGKey(0)
    n, c_in, hw = 2, 4, 16
    c_out, ksize, stride, padding = 8, 3, 1, 1
    kx, kwt, kb = jax.random.split(key, 3)

    x = jax.random.normal(kx, (n, c_in, hw, hw), dtype=jnp.float32)

    # Conv2d weight: kaiming_normal_(a=0, mode='fan_in') -> std = sqrt(2 / fan_in)
    fan_in = c_in * ksize * ksize
    w_std = math.sqrt(2.0 / fan_in)
    weight = w_std * jax.random.normal(kwt, (c_out, c_in, ksize, ksize), dtype=jnp.float32)
    # Conv2d bias default init (mathematically irrelevant before train-mode BN).
    bound = 1.0 / math.sqrt(fan_in)
    bias = jax.random.uniform(kb, (c_out,), minval=-bound, maxval=bound, dtype=jnp.float32)

    # BatchNorm2d keeps default affine init (weights_init_kaiming only touches
    # 'BatchNorm1d'): gamma = 1, beta = 0.
    gamma = jnp.ones((c_out,), jnp.float32)
    beta = jnp.zeros((c_out,), jnp.float32)

    y = conv_bn_relu(x, weight, bias, gamma, beta, stride=stride, padding=padding)
    jax.block_until_ready(y)
    assert y.shape == (n, c_out, hw, hw)

    # Loose check vs f32 reference (kernel uses bf16 MXU inputs + bf16 slabs).
    y_ref = _reference(x, weight, bias, gamma, beta, stride, padding)
    max_err = float(jnp.max(jnp.abs(y - y_ref)))
    assert max_err < 0.15, f"max abs error too large: {max_err}"

    print("KERNEL_OK")
</pallas_src>

<mosaic_0001>
module attributes {stable_mosaic.version = 11 : i64} {
  func.func @conv_stats_kernel(%arg0: i32, %arg1: memref<1x326x4xbf16, #tpu.memory_space<vmem>>, %arg2: memref<9x4x128xbf16, #tpu.memory_space<vmem>>, %arg3: memref<288x1xf32, #tpu.memory_space<vmem>>, %arg4: memref<1x288x128xbf16, #tpu.memory_space<vmem>>, %arg5: memref<1x2x128xf32, #tpu.memory_space<vmem>>, %arg6: memref<288x128xf32, #tpu.memory_space<vmem>>) attributes {dimension_semantics = [#tpu.dimension_semantics<parallel>], iteration_bounds = array<i64: 2>, scalar_prefetch = 0 : i64, scratch_operands = 1 : i64, tpu.core_type = #tpu.core_type<tc>, window_params = [{transform_indices = @transform_0, window_bounds = array<i64: 1, 326, 4>}, {pipeline_mode = #tpu.pipeline_mode<synchronous>, transform_indices = @transform_1, window_bounds = array<i64: 9, 4, 128>}, {pipeline_mode = #tpu.pipeline_mode<synchronous>, transform_indices = @transform_2, window_bounds = array<i64: 288, 1>}, {transform_indices = @transform_3, window_bounds = array<i64: 1, 288, 128>}, {transform_indices = @transform_4, window_bounds = array<i64: 1, 2, 128>}]} {
    %c0 = arith.constant 0 : index
    %c0_0 = arith.constant 0 : index
    %c0_1 = arith.constant 0 : index
    %0 = vector.load %arg1[%c0, %c0_0, %c0_1] : memref<1x326x4xbf16, #tpu.memory_space<vmem>>, vector<1x288x4xbf16>
    %1 = vector.shape_cast %0 : vector<1x288x4xbf16> to vector<288x4xbf16>
    %c0_2 = arith.constant 0 : index
    %c0_3 = arith.constant 0 : index
    %c0_4 = arith.constant 0 : index
    %2 = vector.load %arg2[%c0_2, %c0_3, %c0_4] : memref<9x4x128xbf16, #tpu.memory_space<vmem>>, vector<1x4x128xbf16>
    %3 = vector.shape_cast %2 : vector<1x4x128xbf16> to vector<4x128xbf16>
    %cst = arith.constant dense<0.000000e+00> : vector<288x128xf32>
    %4 = tpu.matmul %1, %3, %cst {dimension_numbers = #tpu.dot_dimension_numbers<[1], [0], [0], [1], [0, 0, 1, 1], [], []>} : vector<288x4xbf16>, vector<4x128xbf16>, vector<288x128xf32> -> vector<288x128xf32>
    %c0_5 = arith.constant 0 : index
    %c0_6 = arith.constant 0 : index
    %5 = vector.load %arg6[%c0_5, %c0_6] : memref<288x128xf32, #tpu.memory_space<vmem>>, vector<288x128xf32>
    tpu.vector_store %arg6[%c0_5, %c0_6], %4 {strides = array<i32>} : memref<288x128xf32, #tpu.memory_space<vmem>>, vector<288x128xf32>,
    %c0_7 = arith.constant 0 : index
    %c1 = arith.constant 1 : index
    %c0_8 = arith.constant 0 : index
    %6 = vector.load %arg1[%c0_7, %c1, %c0_8] : memref<1x326x4xbf16, #tpu.memory_space<vmem>>, vector<1x288x4xbf16>
    %7 = vector.shape_cast %6 : vector<1x288x4xbf16> to vector<288x4xbf16>
    %c1_9 = arith.constant 1 : index
    %c0_10 = arith.constant 0 : index
    %c0_11 = arith.constant 0 : index
    %8 = vector.load %arg2[%c1_9, %c0_10, %c0_11] : memref<9x4x128xbf16, #tpu.memory_space<vmem>>, vector<1x4x128xbf16>
    %9 = vector.shape_cast %8 : vector<1x4x128xbf16> to vector<4x128xbf16>
    %cst_12 = arith.constant dense<0.000000e+00> : vector<288x128xf32>
    %10 = tpu.matmul %7, %9, %cst_12 {dimension_numbers = #tpu.dot_dimension_numbers<[1], [0], [0], [1], [0, 0, 1, 1], [], []>} : vector<288x4xbf16>, vector<4x128xbf16>, vector<288x128xf32> -> vector<288x128xf32>
    %c0_13 = arith.constant 0 : index
    %c0_14 = arith.constant 0 : index
    %11 = vector.load %arg6[%c0_13, %c0_14] : memref<288x128xf32, #tpu.memory_space<vmem>>, vector<288x128xf32>
    %12 = arith.addf %11, %10 : vector<288x128xf32>
    %c0_15 = arith.constant 0 : index
    %c0_16 = arith.constant 0 : index
    %13 = vector.load %arg6[%c0_15, %c0_16] : memref<288x128xf32, #tpu.memory_space<vmem>>, vector<288x128xf32>
    tpu.vector_store %arg6[%c0_15, %c0_16], %12 {strides = array<i32>} : memref<288x128xf32, #tpu.memory_space<vmem>>, vector<288x128xf32>,
    %c0_17 = arith.constant 0 : index
    %c2 = arith.constant 2 : index
    %c0_18 = arith.constant 0 : index
    %14 = vector.load %arg1[%c0_17, %c2, %c0_18] : memref<1x326x4xbf16, #tpu.memory_space<vmem>>, vector<1x288x4xbf16>
    %15 = vector.shape_cast %14 : vector<1x288x4xbf16> to vector<288x4xbf16>
    %c2_19 = arith.constant 2 : index
    %c0_20 = arith.constant 0 : index
    %c0_21 = arith.constant 0 : index
    %16 = vector.load %arg2[%c2_19, %c0_20, %c0_21] : memref<9x4x128xbf16, #tpu.memory_space<vmem>>, vector<1x4x128xbf16>
    %17 = vector.shape_cast %16 : vector<1x4x128xbf16> to vector<4x128xbf16>
    %cst_22 = arith.constant dense<0.000000e+00> : vector<288x128xf32>
    %18 = tpu.matmul %15, %17, %cst_22 {dimension_numbers = #tpu.dot_dimension_numbers<[1], [0], [0], [1], [0, 0, 1, 1], [], []>} : vector<288x4xbf16>, vector<4x128xbf16>, vector<288x128xf32> -> vector<288x128xf32>
    %c0_23 = arith.constant 0 : index
    %c0_24 = arith.constant 0 : index
    %19 = vector.load %arg6[%c0_23, %c0_24] : memref<288x128xf32, #tpu.memory_space<vmem>>, vector<288x128xf32>
    %20 = arith.addf %19, %18 : vector<288x128xf32>
    %c0_25 = arith.constant 0 : index
    %c0_26 = arith.constant 0 : index
    %21 = vector.load %arg6[%c0_25, %c0_26] : memref<288x128xf32, #tpu.memory_space<vmem>>, vector<288x128xf32>
    tpu.vector_store %arg6[%c0_25, %c0_26], %20 {strides = array<i32>} : memref<288x128xf32, #tpu.memory_space<vmem>>, vector<288x128xf32>,
    %c0_27 = arith.constant 0 : index
    %c18 = arith.constant 18 : index
    %c0_28 = arith.constant 0 : index
    %22 = vector.load %arg1[%c0_27, %c18, %c0_28] : memref<1x326x4xbf16, #tpu.memory_space<vmem>>, vector<1x288x4xbf16>
    %23 = vector.shape_cast %22 : vector<1x288x4xbf16> to vector<288x4xbf16>
    %c3 = arith.constant 3 : index
    %c0_29 = arith.constant 0 : index
    %c0_30 = arith.constant 0 : index
    %24 = vector.load %arg2[%c3, %c0_29, %c0_30] : memref<9x4x128xbf16, #tpu.memory_space<vmem>>, vector<1x4x128xbf16>
    %25 = vector.shape_cast %24 : vector<1x4x128xbf16> to vector<4x128xbf16>
    %cst_31 = arith.constant dense<0.000000e+00> : vector<288x128xf32>
    %26 = tpu.matmul %23, %25, %cst_31 {dimension_numbers = #tpu.dot_dimension_numbers<[1], [0], [0], [1], [0, 0, 1, 1], [], []>} : vector<288x4xbf16>, vector<4x128xbf16>, vector<288x128xf32> -> vector<288x128xf32>
    %c0_32 = arith.constant 0 : index
    %c0_33 = arith.constant 0 : index
    %27 = vector.load %arg6[%c0_32, %c0_33] : memref<288x128xf32, #tpu.memory_space<vmem>>, vector<288x128xf32>
    %28 = arith.addf %27, %26 : vector<288x128xf32>
    %c0_34 = arith.constant 0 : index
    %c0_35 = arith.constant 0 : index
    %29 = vector.load %arg6[%c0_34, %c0_35] : memref<288x128xf32, #tpu.memory_space<vmem>>, vector<288x128xf32>
    tpu.vector_store %arg6[%c0_34, %c0_35], %28 {strides = array<i32>} : memref<288x128xf32, #tpu.memory_space<vmem>>, vector<288x128xf32>,
    %c0_36 = arith.constant 0 : index
    %c19 = arith.constant 19 : index
    %c0_37 = arith.constant 0 : index
    %30 = vector.load %arg1[%c0_36, %c19, %c0_37] : memref<1x326x4xbf16, #tpu.memory_space<vmem>>, vector<1x288x4xbf16>
    %31 = vector.shape_cast %30 : vector<1x288x4xbf16> to vector<288x4xbf16>
    %c4 = arith.constant 4 : index
    %c0_38 = arith.constant 0 : index
    %c0_39 = arith.constant 0 : index
    %32 = vector.load %arg2[%c4, %c0_38, %c0_39] : memref<9x4x128xbf16, #tpu.memory_space<vmem>>, vector<1x4x128xbf16>
    %33 = vector.shape_cast %32 : vector<1x4x128xbf16> to vector<4x128xbf16>
    %cst_40 = arith.constant dense<0.000000e+00> : vector<288x128xf32>
    %34 = tpu.matmul %31, %33, %cst_40 {dimension_numbers = #tpu.dot_dimension_numbers<[1], [0], [0], [1], [0, 0, 1, 1], [], []>} : vector<288x4xbf16>, vector<4x128xbf16>, vector<288x128xf32> -> vector<288x128xf32>
    %c0_41 = arith.constant 0 : index
    %c0_42 = arith.constant 0 : index
    %35 = vector.load %arg6[%c0_41, %c0_42] : memref<288x128xf32, #tpu.memory_space<vmem>>, vector<288x128xf32>
    %36 = arith.addf %35, %34 : vector<288x128xf32>
    %c0_43 = arith.constant 0 : index
    %c0_44 = arith.constant 0 : index
    %37 = vector.load %arg6[%c0_43, %c0_44] : memref<288x128xf32, #tpu.memory_space<vmem>>, vector<288x128xf32>
    tpu.vector_store %arg6[%c0_43, %c0_44], %36 {strides = array<i32>} : memref<288x128xf32, #tpu.memory_space<vmem>>, vector<288x128xf32>,
    %c0_45 = arith.constant 0 : index
    %c20 = arith.constant 20 : index
    %c0_46 = arith.constant 0 : index
    %38 = vector.load %arg1[%c0_45, %c20, %c0_46] : memref<1x326x4xbf16, #tpu.memory_space<vmem>>, vector<1x288x4xbf16>
    %39 = vector.shape_cast %38 : vector<1x288x4xbf16> to vector<288x4xbf16>
    %c5 = arith.constant 5 : index
    %c0_47 = arith.constant 0 : index
    %c0_48 = arith.constant 0 : index
    %40 = vector.load %arg2[%c5, %c0_47, %c0_48] : memref<9x4x128xbf16, #tpu.memory_space<vmem>>, vector<1x4x128xbf16>
    %41 = vector.shape_cast %40 : vector<1x4x128xbf16> to vector<4x128xbf16>
    %cst_49 = arith.constant dense<0.000000e+00> : vector<288x128xf32>
    %42 = tpu.matmul %39, %41, %cst_49 {dimension_numbers = #tpu.dot_dimension_numbers<[1], [0], [0], [1], [0, 0, 1, 1], [], []>} : vector<288x4xbf16>, vector<4x128xbf16>, vector<288x128xf32> -> vector<288x128xf32>
    %c0_50 = arith.constant 0 : index
    %c0_51 = arith.constant 0 : index
    %43 = vector.load %arg6[%c0_50, %c0_51] : memref<288x128xf32, #tpu.memory_space<vmem>>, vector<288x128xf32>
    %44 = arith.addf %43, %42 : vector<288x128xf32>
    %c0_52 = arith.constant 0 : index
    %c0_53 = arith.constant 0 : index
    %45 = vector.load %arg6[%c0_52, %c0_53] : memref<288x128xf32, #tpu.memory_space<vmem>>, vector<288x128xf32>
    tpu.vector_store %arg6[%c0_52, %c0_53], %44 {strides = array<i32>} : memref<288x128xf32, #tpu.memory_space<vmem>>, vector<288x128xf32>,
    %c0_54 = arith.constant 0 : index
    %c36 = arith.constant 36 : index
    %c0_55 = arith.constant 0 : index
    %46 = vector.load %arg1[%c0_54, %c36, %c0_55] : memref<1x326x4xbf16, #tpu.memory_space<vmem>>, vector<1x288x4xbf16>
    %47 = vector.shape_cast %46 : vector<1x288x4xbf16> to vector<288x4xbf16>
    %c6 = arith.constant 6 : index
    %c0_56 = arith.constant 0 : index
    %c0_57 = arith.constant 0 : index
    %48 = vector.load %arg2[%c6, %c0_56, %c0_57] : memref<9x4x128xbf16, #tpu.memory_space<vmem>>, vector<1x4x128xbf16>
    %49 = vector.shape_cast %48 : vector<1x4x128xbf16> to vector<4x128xbf16>
    %cst_58 = arith.constant dense<0.000000e+00> : vector<288x128xf32>
    %50 = tpu.matmul %47, %49, %cst_58 {dimension_numbers = #tpu.dot_dimension_numbers<[1], [0], [0], [1], [0, 0, 1, 1], [], []>} : vector<288x4xbf16>, vector<4x128xbf16>, vector<288x128xf32> -> vector<288x128xf32>
    %c0_59 = arith.constant 0 : index
    %c0_60 = arith.constant 0 : index
    %51 = vector.load %arg6[%c0_59, %c0_60] : memref<288x128xf32, #tpu.memory_space<vmem>>, vector<288x128xf32>
    %52 = arith.addf %51, %50 : vector<288x128xf32>
    %c0_61 = arith.constant 0 : index
    %c0_62 = arith.constant 0 : index
    %53 = vector.load %arg6[%c0_61, %c0_62] : memref<288x128xf32, #tpu.memory_space<vmem>>, vector<288x128xf32>
    tpu.vector_store %arg6[%c0_61, %c0_62], %52 {strides = array<i32>} : memref<288x128xf32, #tpu.memory_space<vmem>>, vector<288x128xf32>,
    %c0_63 = arith.constant 0 : index
    %c37 = arith.constant 37 : index
    %c0_64 = arith.constant 0 : index
    %54 = vector.load %arg1[%c0_63, %c37, %c0_64] : memref<1x326x4xbf16, #tpu.memory_space<vmem>>, vector<1x288x4xbf16>
    %55 = vector.shape_cast %54 : vector<1x288x4xbf16> to vector<288x4xbf16>
    %c7 = arith.constant 7 : index
    %c0_65 = arith.constant 0 : index
    %c0_66 = arith.constant 0 : index
    %56 = vector.load %arg2[%c7, %c0_65, %c0_66] : memref<9x4x128xbf16, #tpu.memory_space<vmem>>, vector<1x4x128xbf16>
    %57 = vector.shape_cast %56 : vector<1x4x128xbf16> to vector<4x128xbf16>
    %cst_67 = arith.constant dense<0.000000e+00> : vector<288x128xf32>
    %58 = tpu.matmul %55, %57, %cst_67 {dimension_numbers = #tpu.dot_dimension_numbers<[1], [0], [0], [1], [0, 0, 1, 1], [], []>} : vector<288x4xbf16>, vector<4x128xbf16>, vector<288x128xf32> -> vector<288x128xf32>
    %c0_68 = arith.constant 0 : index
    %c0_69 = arith.constant 0 : index
    %59 = vector.load %arg6[%c0_68, %c0_69] : memref<288x128xf32, #tpu.memory_space<vmem>>, vector<288x128xf32>
    %60 = arith.addf %59, %58 : vector<288x128xf32>
    %c0_70 = arith.constant 0 : index
    %c0_71 = arith.constant 0 : index
    %61 = vector.load %arg6[%c0_70, %c0_71] : memref<288x128xf32, #tpu.memory_space<vmem>>, vector<288x128xf32>
    tpu.vector_store %arg6[%c0_70, %c0_71], %60 {strides = array<i32>} : memref<288x128xf32, #tpu.memory_space<vmem>>, vector<288x128xf32>,
    %c0_72 = arith.constant 0 : index
    %c38 = arith.constant 38 : index
    %c0_73 = arith.constant 0 : index
    %62 = vector.load %arg1[%c0_72, %c38, %c0_73] : memref<1x326x4xbf16, #tpu.memory_space<vmem>>, vector<1x288x4xbf16>
    %63 = vector.shape_cast %62 : vector<1x288x4xbf16> to vector<288x4xbf16>
    %c8 = arith.constant 8 : index
    %c0_74 = arith.constant 0 : index
    %c0_75 = arith.constant 0 : index
    %64 = vector.load %arg2[%c8, %c0_74, %c0_75] : memref<9x4x128xbf16, #tpu.memory_space<vmem>>, vector<1x4x128xbf16>
    %65 = vector.shape_cast %64 : vector<1x4x128xbf16> to vector<4x128xbf16>
    %cst_76 = arith.constant dense<0.000000e+00> : vector<288x128xf32>
    %66 = tpu.matmul %63, %65, %cst_76 {dimension_numbers = #tpu.dot_dimension_numbers<[1], [0], [0], [1], [0, 0, 1, 1], [], []>} : vector<288x4xbf16>, vector<4x128xbf16>, vector<288x128xf32> -> vector<288x128xf32>
    %c0_77 = arith.constant 0 : index
    %c0_78 = arith.constant 0 : index
    %67 = vector.load %arg6[%c0_77, %c0_78] : memref<288x128xf32, #tpu.memory_space<vmem>>, vector<288x128xf32>
    %68 = arith.addf %67, %66 : vector<288x128xf32>
    %c0_79 = arith.constant 0 : index
    %c0_80 = arith.constant 0 : index
    %69 = vector.load %arg6[%c0_79, %c0_80] : memref<288x128xf32, #tpu.memory_space<vmem>>, vector<288x128xf32>
    tpu.vector_store %arg6[%c0_79, %c0_80], %68 {strides = array<i32>} : memref<288x128xf32, #tpu.memory_space<vmem>>, vector<288x128xf32>,
    %c0_81 = arith.constant 0 : index
    %c0_82 = arith.constant 0 : index
    %70 = vector.load %arg6[%c0_81, %c0_82] : memref<288x128xf32, #tpu.memory_space<vmem>>, vector<288x128xf32>
    %c0_83 = arith.constant 0 : index
    %c0_84 = arith.constant 0 : index
    %71 = vector.load %arg3[%c0_83, %c0_84] : memref<288x1xf32, #tpu.memory_space<vmem>>, vector<288x1xf32>
    %72 = vector.broadcast %71 : vector<288x1xf32> to vector<288x128xf32>
    %73 = arith.mulf %70, %72 : vector<288x128xf32>
    %cst_85 = arith.constant dense<0.000000e+00> : vector<128xf32>
    %74 = vector.multi_reduction <add>, %73, %cst_85 [0] : vector<288x128xf32> to vector<128xf32>
    %75 = vector.shape_cast %74 : vector<128xf32> to vector<1x128xf32>
    %cst_86 = arith.constant 3.906250e-03 : f32
    %76 = vector.broadcast %cst_86 : f32 to vector<1x128xf32>
    %77 = arith.mulf %75, %76 : vector<1x128xf32>
    %78 = vector.broadcast %77 : vector<1x128xf32> to vector<288x128xf32>
    %79 = arith.subf %70, %78 : vector<288x128xf32>
    %80 = vector.broadcast %71 : vector<288x1xf32> to vector<288x128xf32>
    %81 = arith.mulf %79, %80 : vector<288x128xf32>
    %82 = arith.mulf %81, %81 : vector<288x128xf32>
    %cst_87 = arith.constant dense<0.000000e+00> : vector<128xf32>
    %83 = vector.multi_reduction <add>, %82, %cst_87 [0] : vector<288x128xf32> to vector<128xf32>
    %84 = vector.shape_cast %83 : vector<128xf32> to vector<1x128xf32>
    %85 = arith.truncf %70 : vector<288x128xf32> to vector<288x128xbf16>
    %c0_88 = arith.constant 0 : index
    %c0_89 = arith.constant 0 : index
    %c0_90 = arith.constant 0 : index
    %86 = vector.load %arg4[%c0_88, %c0_89, %c0_90] : memref<1x288x128xbf16, #tpu.memory_space<vmem>>, vector<1x288x128xbf16>
    %87 = vector.shape_cast %86 : vector<1x288x128xbf16> to vector<288x128xbf16>
    %88 = vector.shape_cast %85 : vector<288x128xbf16> to vector<1x288x128xbf16>
    tpu.vector_store %arg4[%c0_88, %c0_89, %c0_90], %88 {strides = array<i32>} : memref<1x288x128xbf16, #tpu.memory_space<vmem>>, vector<1x288x128xbf16>,
    %89 = tpu.concatenate %75, %84 in 0 : vector<1x128xf32>, vector<1x128xf32> -> vector<2x128xf32>
    %c0_91 = arith.constant 0 : index
    %c0_92 = arith.constant 0 : index
    %c0_93 = arith.constant 0 : index
    %90 = vector.load %arg5[%c0_91, %c0_92, %c0_93] : memref<1x2x128xf32, #tpu.memory_space<vmem>>, vector<1x2x128xf32>
    %91 = vector.shape_cast %90 : vector<1x2x128xf32> to vector<2x128xf32>
    %92 = vector.shape_cast %89 : vector<2x128xf32> to vector<1x2x128xf32>
    tpu.vector_store %arg5[%c0_91, %c0_92, %c0_93], %92 {strides = array<i32>} : memref<1x2x128xf32, #tpu.memory_space<vmem>>, vector<1x2x128xf32>,
    return
  }
  func.func @transform_0(%arg0: i32) -> (i32, i32, i32) {
    %c0_i32 = arith.constant 0 : i32
    %c0_i32_0 = arith.constant 0 : i32
    %c0_i32_1 = arith.constant 0 : i32
    return %arg0, %c0_i32, %c0_i32_0 : i32, i32, i32
  }
  func.func @transform_1(%arg0: i32) -> (i32, i32, i32) {
    %c0_i32 = arith.constant 0 : i32
    %c0_i32_0 = arith.constant 0 : i32
    %c0_i32_1 = arith.constant 0 : i32
    %c0_i32_2 = arith.constant 0 : i32
    return %c0_i32, %c0_i32_0, %c0_i32_1 : i32, i32, i32
  }
  func.func @transform_2(%arg0: i32) -> (i32, i32) {
    %c0_i32 = arith.constant 0 : i32
    %c0_i32_0 = arith.constant 0 : i32
    %c0_i32_1 = arith.constant 0 : i32
    return %c0_i32, %c0_i32_0 : i32, i32
  }
  func.func @transform_3(%arg0: i32) -> (i32, i32, i32) {
    %c0_i32 = arith.constant 0 : i32
    %c0_i32_0 = arith.constant 0 : i32
    %c0_i32_1 = arith.constant 0 : i32
    return %arg0, %c0_i32, %c0_i32_0 : i32, i32, i32
  }
  func.func @transform_4(%arg0: i32) -> (i32, i32, i32) {
    %c0_i32 = arith.constant 0 : i32
    %c0_i32_0 = arith.constant 0 : i32
    %c0_i32_1 = arith.constant 0 : i32
    return %arg0, %c0_i32, %c0_i32_0 : i32, i32, i32
  }
}

</mosaic_0001>

<bundles_post_ra>
// kernel: tpu_custom_call.1
= control target key start
LH: loop header
LB: loop body
LE: loop exit
PB: predicated region body
PF: predicated region fallthrough
CT: control target
= control target key end

     0   :  { %10 = vsyncpa [#allocation4], 0  ;;  %s8832_s0 = inlined_call_operand.vmem [shape: bf16[2,326,4], index: 0, kind: input, shape index: {}]   ;;  %s8833_s1 = inlined_call_operand.vmem [shape: bf16[9,4,128], index: 1, kind: input, shape index: {}]   ;;  %s8834_s2 = inlined_call_operand.vmem [shape: f32[288,1], index: 2, kind: input, shape index: {}]   ;;  %s8835_s3 = inlined_call_operand.hbm [shape: bf16[2,288,128], index: 3, kind: output, shape index: {0}]   ;;  %s8836_s4 = inlined_call_operand.hbm [shape: f32[2,2,128], index: 4, kind: output, shape index: {1}]  }
   0x1   :  { %12 = vsyncpa [#allocation4 + $0x1], 0 }
   0x2   :  { %13 = vsyncpa [#allocation6], 0 }
   0x3   :  { %15 = vsyncpa [#allocation6 + $0x1], 0  ;;  %s7558_s15 = smov 0   ;;  %s7560_s16 = smov 0  }
   0x4   :  { %s7562_s17 = smov 0   ;;  %s7564_s18 = smov 0  }
   0x5 LB: > { %s7579_s19 = sadd.s32 4294967295, %s7526_s18   ;;  %s5866_s20 = sadd.s32 4294967294, %s7526_s18   ;;  %s7526_s18 = sphi %s7564_s18, %s8908_s18   ;;  %s7522_s17 = sphi %s7562_s17, %s8907_s17   ;;  %s7518_s16 = sphi %s7560_s16, %s8906_s16   ;;  %s7514_s15 = sphi %s7558_s15, %s8905_s15  }
   0x6   : > { %s7583_s21 = sadd.s32 1, %s7526_s18   ;;  %s96_s22 = sadd.s32 1, %s7522_s17 }
   0x7   : > { %s93_s23 = ssub.s32 %s7526_s18, %s7583_s21  ;;  %p106_p0 = scmp.ne.s32.totalorder %s7522_s17, %s7518_s16 }
   0x8   : > { %p94_p1 = scmp.eq.s32.totalorder %s93_s23, 0  ;;  %p107_p2 = scmp.eq.s32.totalorder %s7579_s19, 1 }
   0x9   : > { %p112_p3 = scmp.ne.s32.totalorder %s7518_s16, %s7514_s15  ;;  %p113_p4 = scmp.eq.s32.totalorder %s5866_s20, 1 }
   0xa   : > { %s7594_s24 = scalar_select %p94_p1, %s7522_s17, %s96_s22  }
   0xb   : > { %p7596_p5 = por %p107_p2, %p106_p0  ;;  %p7600_p6 = por %p113_p4, %p112_p3 }
   0xc   : > { %p5869_p7 = scmp.ge.s32.totalorder %s7526_s18, 1  ;;  %p171_p8 = scmp.lt.s32.totalorder %s7526_s18, 3 }
   0xe   : > { %p172_p9 = pnand %p5869_p7, %p171_p8 }
  0x10   : > { %175 = sbr.rel (%p172_p9) target bundleno = 715 (0x2cb), region = 32 }
  0x17   : > { %v244_v0 = vld [vmem:[%s8833_s1] sm:$0x3]  ;;  %vm390_vm0 = vcmask 1041408   ;;  %p202_p10 = scmp.lt.s32.totalorder %s7579_s19, 1  ;;  %v6022_v2 = vld [vmem:[%s8833_s1 + $0x8] sm:$0x3] }
  0x18   : > { %7199 = vmatprep.subr.msk.bf16.mxu1 %vm390_vm0, %v244_v0  ;;  %v392_v1 = vsel %vm390_vm0, %v244_v0, 0  ;;  %7203 = vmatprep.subr.msk.bf16.mxu0 %vm390_vm0, %v6022_v2  ;;  %v7618_v3 = vsel %vm390_vm0, %v6022_v2, 0  ;;  %v6060_v4 = vld [vmem:[%s8833_s1 + $0xa] sm:$0x3]  ;;  %v5908_v5 = vld [vmem:[%s8833_s1 + $0x2] sm:$0x3] }
  0x19   : > { %6568 = vmatpush3.bf16.msra.mxu1 %v392_v1  ;;  %s203_s5 = scalar_select %p202_p10, %s7579_s19, 1  ;;  %6720 = vmatpush3.bf16.msra.mxu0 %v7618_v3  ;;  %vm335_vm1 = vcmask 31744   ;;  %vm2385_vm2 = vsmask.f32 6400  ;;  %v7638_v7 = vld [vmem:[%s8833_s1 + $0x4] sm:$0x3] }
  0x1a   : > { %7200 = vmatprep.subr.msk.bf16.mxu1 %vm390_vm0, %v5908_v5  ;;  %7205 = vmatprep.subr.msk.bf16.mxu0 %vm390_vm0, %v6060_v4  ;;  %v943_v9 = vsel %vm390_vm0, %v5908_v5, 0  ;;  %v3123_v18 = vsel %vm390_vm0, %v6060_v4, 0  ;;  %v7663_v40 = vld [vmem:[%s8833_s1 + $0xc] sm:$0x3]  ;;  %vm3030_vm3 = vcmask 1045504   ;;  %vm1362_vm5 = vcmask 1046528  }
  0x1b   : > { %s7210_s10 = smul.u32 164, %s203_s5  ;;  %vm739_vm4 = vsmask.f32 7424  ;;  %vm4053_vm6 = vsmask.f32 5376  ;;  %vm4698_vm7 = vcmask 1044480  }
  0x1c   : > { %s7211_s29 = smul.u32 2304, %s7579_s19 }
  0x1d   : > { %s7632_s13 = scalar_lea.vmem %s8832_s0, %s7210_s10  ;;  %s7529_s10 = smov [#allocation3]  }
  0x1e   : > { %v7261_v6 = vld [vmem:[%s7632_s13] sm:$0xff]   ;;  %v7262_v8 = vld [vmem:[%s7632_s13 + $0x8] sm:$0xff]   ;;  %v7264_v11 = vld [vmem:[%s7632_s13 + $0x10] sm:$0xff]   ;;  %s8631_s7 = scalar_lea.hbm %s8835_s3, %s7211_s29  ;;  %s7436_s11 = sshll.u32 %s7529_s10, 4  ;;  %s7437_s11 = int_to_ptr.vmem [resolvable:$false] %s7436_s11 }
  0x1f   : > { %6569 = vmatprep.mubr.msk.bf16.mxu1 %vm335_vm1, %v7261_v6  ;;  %v7263_v10 = vld [vmem:[%s7632_s13 + $0x8] sm:$0xfe]   ;;  %v7265_v12 = vld [vmem:[%s7632_s13 + $0x10] sm:$0xff]   ;;  %v2395_v15 = vshrl.u32 %v7264_v11, 16  ;;  %v2398_v16 = vshll.u32 %v7264_v11, 16  ;;  %v7266_v17 = vld [vmem:[%s7632_s13 + $0x18] sm:$0xff]  }
  0x20   : > { %6570 = vmatmul.mubr.msk.bf16.vlgmr.msra.gmra.mrb[0].mxu1 %vm335_vm1, %v7262_v8  ;;  %v2387_v13 = vshrl.u32 %v7263_v10, 16  ;;  %v2390_v14 = vshll.u32 %v7263_v10, 16  ;;  %v2404_v23 = vshrl.u32 %v7266_v17, 16  ;;  %v2407_v24 = vshll.u32 %v7266_v17, 16  ;;  %v7267_v25 = vld [vmem:[%s7632_s13 + $0x18] sm:$0xff]   ;;  %v7268_v26 = vld [vmem:[%s7632_s13 + $0x20] sm:$0xff]  }
  0x21   : > { %6606 = vmatpush3.bf16.msra.mxu1 %v943_v9  ;;  %6573 = vmatprep.mubr.msk.bf16.mxu1 %vm335_vm1, %v7265_v12  ;;  %v2397_v21 = vrot.slane %v2395_v15, 1  ;;  %v2400_v22 = vrot.slane %v2398_v16, 2  ;;  %v2413_v31 = vshrl.u32 %v7268_v26, 16  ;;  %v2416_v32 = vshll.u32 %v7268_v26, 16  ;;  %v7269_v33 = vld [vmem:[%s7632_s13 + $0x20] sm:$0xff]   ;;  %v7270_v34 = vld [vmem:[%s7632_s13 + $0x28] sm:$0xff]  }
  0x22   : > { %7201 = vmatprep.subr.msk.bf16.mxu1 %vm390_vm0, %v7638_v7  ;;  %v2389_v19 = vrot.slane %v2387_v13, 1  ;;  %v2392_v20 = vrot.slane %v2390_v14, 2  ;;  %v2406_v29 = vrot.slane %v2404_v23, 1  ;;  %v2409_v30 = vrot.slane %v2407_v24, 2  ;;  %v7271_v42 = vld [vmem:[%s7632_s13 + $0x28] sm:$0xff]   ;;  %v7272_v43 = vld [vmem:[%s7632_s13 + $0x30] sm:$0xff]  }
  0x23   : > { %v2401_v28 = vor.u32 %v2400_v22, %v2397_v21  ;;  %v2415_v37 = vrot.slane %v2413_v31, 1  ;;  %v2418_v38 = vrot.slane %v2416_v32, 2  ;;  %v2422_v39 = vshrl.u32 %v7270_v34, 16  ;;  %v7273_v47 = vld [vmem:[%s7632_s13 + $0x30] sm:$0xff]   ;;  %v7274_v51 = vld [vmem:[%s7632_s13 + $0x38] sm:$0xff]   ;;  %v7276_v58 = vld [vmem:[%s7632_s13 + $0x40] sm:$0xff]  }
  0x24   : > { %v2393_v27 = vor.u32 %v2392_v20, %v2389_v19  ;;  %v2410_v36 = vor.u32 %v2409_v30, %v2406_v29  ;;  %v2425_v41 = vshll.u32 %v7270_v34, 16  ;;  %v2431_v49 = vshrl.u32 %v7272_v43, 16  ;;  %v7278_v1 = vld [vmem:[%s7632_s13 + $0x48] sm:$0xff]   ;;  %v7275_v4 = vld [vmem:[%s7632_s13 + $0x38] sm:$0xff]   ;;  %v7280_v8 = vld [vmem:[%s7632_s13 + $0x50] sm:$0xff]   ;;  %s7438_s12 = scalar_lea.vmem %s7437_s11, 4608 }
  0x25   : > { %v2419_v45 = vor.u32 %v2418_v38, %v2415_v37  ;;  %v2424_v46 = vrot.slane %v2422_v39, 1  ;;  %v2434_v50 = vshll.u32 %v7272_v43, 16  ;;  %v2440_v56 = vshrl.u32 %v7274_v51, 16  ;;  %v7277_v12 = vld [vmem:[%s7632_s13 + $0x40] sm:$0xff]   ;;  %v7279_v23 = vld [vmem:[%s7632_s13 + $0x48] sm:$0xff]   ;;  %v7281_v24 = vld [vmem:[%s7632_s13 + $0x50] sm:$0xff]  }
  0x26   : > { %v2402_v35 = vsel %vm2385_vm2, %v2393_v27, %v2401_v28  ;;  %v2411_v44 = vsel %vm2385_vm2, %v2401_v28, %v2410_v36  ;;  %v2427_v48 = vrot.slane %v2425_v41, 2  ;;  %v2433_v54 = vrot.slane %v2431_v49, 1  ;;  %v7285_v29 = vld [vmem:[%s7632_s13 + $0x10] sm:$0xff]   ;;  %v7284_v34 = vld [vmem:[%s7632_s13 + $0x8] sm:$0xfc]   ;;  %v7286_v37 = vld [vmem:[%s7632_s13 + $0x60] sm:$0xff]  }
  0x27   : > { %6721 = vmatprep.mubr.msk.bf16.mxu0 %vm335_vm1, %v2402_v35  ;;  %v2420_v52 = vsel %vm2385_vm2, %v2410_v36, %v2419_v45  ;;  %v2436_v55 = vrot.slane %v2434_v50, 2  ;;  %v2443_v57 = vshll.u32 %v7274_v51, 16  ;;  %v2442_v60 = vrot.slane %v2440_v56, 1  ;;  %v7283_v35 = vld [vmem:[%s7632_s13 + $0x58] sm:$0xff]   ;;  %v7298_v49 = vld [vmem:[%s7632_s13] sm:$0xff]   ;;  %v7291_v50 = vld [vmem:[%s7632_s13 + $0x28] sm:$0xff]  }
  0x28   : > { %6574 = vmatmul.mubr.msk.bf16.gmra.mrb[4].mxu1 %vm335_vm1, %v7267_v25  ;;  %6722 = vmatmul.mubr.msk.bf16.vlgmr.msra.gmra.mrb[0].mxu0 %vm335_vm1, %v2411_v44  ;;  %v2428_v53 = vor.u32 %v2427_v48, %v2424_v46  ;;  %v2449_v63 = vshrl.u32 %v7276_v58, 16  ;;  %v2452_v0 = vshll.u32 %v7276_v58, 16  ;;  %v2458_v9 = vshrl.u32 %v7278_v1, 16  ;;  %v7289_v44 = vld [vmem:[%s7632_s13 + $0x20] sm:$0xff]  }
  0x29   : > { %6577 = vmatprep.mubr.msk.bf16.mxu1 %vm335_vm1, %v7269_v33  ;;  %6758 = vmatpush3.bf16.msra.mxu0 %v3123_v18  ;;  %v2437_v59 = vor.u32 %v2436_v55, %v2433_v54  ;;  %v2445_v62 = vrot.slane %v2443_v57, 2  ;;  %v2461_v10 = vshll.u32 %v7278_v1, 16  ;;  %v2467_v14 = vshrl.u32 %v7280_v8, 16  ;;  %v7282_v18 = vld [vmem:[%s7632_s13 + $0x58] sm:$0xff]   ;;  %v7293_v55 = vld [vmem:[%s7632_s13 + $0x30] sm:$0xff]  }
  0x2a   : > { %6725 = vmatprep.mubr.msk.bf16.mxu0 %vm335_vm1, %v2420_v52  ;;  %7206 = vmatprep.subr.msk.bf16.mxu0 %vm390_vm0, %v7663_v40  ;;  %v2429_v61 = vsel %vm2385_vm2, %v2419_v45, %v2428_v53  ;;  %v2451_v5 = vrot.slane %v2449_v63, 1  ;;  %v2454_v6 = vrot.slane %v2452_v0, 2  ;;  %v2470_v15 = vshll.u32 %v7280_v8, 16  ;;  %v7288_v45 = vld [vmem:[%s7632_s13 + $0x68] sm:$0xff]   ;;  %v7295_v0 = vld [vmem:[%s7632_s13 + $0x38] sm:$0xff]   ;;  %v7301_v1 = vld [vmem:[%s7632_s13 + $0x10] sm:$0xff]  }
  0x2b   : > { %v2438_v2 = vsel %vm2385_vm2, %v2428_v53, %v2437_v59  ;;  %v2446_v11 = vor.u32 %v2445_v62, %v2442_v60  ;;  %v2460_v16 = vrot.slane %v2458_v9, 1  ;;  %v2463_v17 = vrot.slane %v2461_v10, 2  ;;  %v7299_v53 = vld [vmem:[%s7632_s13 + $0x8] sm:$0xff]  }
  0x2c   : > { %v2455_v13 = vor.u32 %v2454_v6, %v2451_v5  ;;  %v2469_v21 = vrot.slane %v2467_v14, 1  ;;  %v2472_v22 = vrot.slane %v2470_v15, 2  ;;  %v2476_v26 = vshrl.u32 %v7282_v18, 16  ;;  %v7731_v57 = vld [vmem:[%s8833_s1 + $0xe] sm:$0x3]  ;;  %v7303_v6 = vld [vmem:[%s7632_s13 + $0x18] sm:$0xff]  }
  0x2d   : > { %v2447_v19 = vsel %vm2385_vm2, %v2437_v59, %v2446_v11  ;;  %v2464_v25 = vor.u32 %v2463_v17, %v2460_v16  ;;  %v2479_v27 = vshll.u32 %v7282_v18, 16  ;;  %v3031_v38 = vrot.slane %v7284_v34, 2  ;;  %v7292_v59 = vld [vmem:[%s7632_s13 + $0x78] sm:$0xff]   ;;  %v7296_v10 = vld [vmem:[%s7632_s13 + $0x88] sm:$0xff]  }
  0x2e   : > { %v2456_v20 = vsel %vm2385_vm2, %v2446_v11, %v2455_v13  ;;  %v2473_v28 = vor.u32 %v2472_v22, %v2469_v21  ;;  %v2478_v31 = vrot.slane %v2476_v26, 1  ;;  %v3032_v39 = vrot.slane %v7285_v29, 2  ;;  %v7300_v18 = vld [vmem:[%s7632_s13 + $0x48] sm:$0xff]  }
  0x2f   : > { %v2465_v30 = vsel %vm2385_vm2, %v2455_v13, %v2464_v25  ;;  %v2481_v32 = vrot.slane %v2479_v27, 2  ;;  %v3036_v48 = vrot.slane %v7289_v44, 2  ;;  %v3634_v52 = vsel %vm390_vm0, %v7663_v40, 0  ;;  %v7294_v40 = vld [vmem:[%s7632_s13 + $0x80] sm:$0xff]   ;;  %v7307_v27 = vld [vmem:[%s7632_s13 + $0x28] sm:$0xff]   ;;  %v7311_v44 = vld [vmem:[%s7632_s13 + $0x38] sm:$0xff]  }
  0x30   : > { %6578 = vmatmul.mubr.msk.bf16.gmra.mrb[8].mxu1 %vm335_vm1, %v7271_v42  ;;  %6726 = vmatmul.mubr.msk.bf16.gmra.mrb[4].mxu0 %vm335_vm1, %v2429_v61  ;;  %v2474_v33 = vsel %vm2385_vm2, %v2464_v25, %v2473_v28  ;;  %v7287_v42 = vld [vmem:[%s7632_s13 + $0x18] sm:$0xff]   ;;  %v3033_v43 = vsel %vm3030_vm3, %v3031_v38, %v3032_v39  ;;  %v743_v56 = vshll.u32 %v7298_v49, 16  ;;  %v3038_v58 = vrot.slane %v7291_v50, 2 }
  0x31   : > { %6581 = vmatprep.mubr.msk.bf16.mxu1 %vm335_vm1, %v7273_v47  ;;  %6729 = vmatprep.mubr.msk.bf16.mxu0 %vm335_vm1, %v2438_v2  ;;  %v7704_v36 = vor.u32 %v2481_v32, %v2478_v31  ;;  %v3034_v46 = vrot.slane %v7287_v42, 2  ;;  %v7290_v47 = vld [vmem:[%s7632_s13 + $0x70] sm:$0xff]   ;;  %v748_v60 = vshll.u32 %v7299_v53, 16  ;;  %v3040_v61 = vrot.slane %v7293_v55, 2  ;;  %v7304_v38 = vld [vmem:[%s7632_s13 + $0x58] sm:$0xff]  }
  0x32   : > { %v741_v62 = vshrl.u32 %v7298_v49, 16  ;;  %v745_v63 = vrot.slane %v743_v56, 1  ;;  %v3039_v2 = vsel %vm3030_vm3, %v3036_v48, %v3038_v58  ;;  %v756_v11 = vshll.u32 %v7301_v1, 16  ;;  %v7308_v56 = vld [vmem:[%s7632_s13 + $0x68] sm:$0xff]  }
  0x33   : > { %v2483_v41 = vsel %vm2385_vm2, %v2473_v28, %v7704_v36  ;;  %v3035_v51 = vsel %vm3030_vm3, %v3032_v39, %v3034_v46  ;;  %v3037_v54 = vsel %vm3030_vm3, %v3034_v46, %v3036_v48  ;;  %v750_v5 = vrot.slane %v748_v60, 1 }
  0x34   : > { %v3041_v8 = vsel %vm3030_vm3, %v3038_v58, %v3040_v61  ;;  %v746_v9 = vor.u32 %v745_v63, %v741_v62  ;;  %v752_v13 = vshrl.u32 %v7299_v53, 16  ;;  %v760_v16 = vshrl.u32 %v7301_v1, 16  ;;  %v7315_v1 = vld [vmem:[%s7632_s13 + $0x48] sm:$0xff]  }
  0x35   : > { %v764_v17 = vshll.u32 %v7303_v6, 16  ;;  %v1455_v28 = vsel %vm390_vm0, %v7638_v7, 0  ;;  %v3046_v29 = vrot.slane %v7300_v18, 2  ;;  %v7306_v7 = vld [vmem:[%s7632_s13 + $0x60] sm:$0xff]   ;;  %v3050_v48 = vrot.slane %v7304_v38, 2 }
  0x36   : > { %v751_v15 = vsel %vm739_vm4, %v746_v9, %v750_v5  ;;  %v754_v22 = vor.u32 %v752_v13, %v750_v5  ;;  %v3052_v49 = vrot.slane %v7306_v7, 2 }
  0x37   : > { %v766_v26 = vrot.slane %v764_v17, 1  ;;  %v7314_v17 = vld [vmem:[%s7632_s13 + $0x80] sm:$0xff]  }
  0x38   : > { %6582 = vmatmul.mubr.msk.bf16.gmra.mrb[12].mxu1 %vm335_vm1, %v7275_v4  ;;  %6730 = vmatmul.mubr.msk.bf16.gmra.mrb[8].mxu0 %vm335_vm1, %v2447_v19  ;;  %v7297_v4 = vld [vmem:[%s7632_s13 + $0x40] sm:$0xff]   ;;  %v758_v19 = vrot.slane %v756_v11, 1  ;;  %v3053_v62 = vsel %vm3030_vm3, %v3050_v48, %v3052_v49  ;;  %v812_v11 = vshll.u32 %v7315_v1, 16 }
  0x39   : > { %6585 = vmatprep.mubr.msk.bf16.mxu1 %vm335_vm1, %v7277_v12  ;;  %6733 = vmatprep.mubr.msk.bf16.mxu0 %vm335_vm1, %v2456_v20  ;;  %v3042_v12 = vrot.slane %v7295_v0, 2  ;;  %v3044_v14 = vrot.slane %v7297_v4, 2  ;;  %v7305_v20 = vld [vmem:[%s7632_s13 + $0x20] sm:$0xff]  }
  0x3a   : > { %v762_v25 = vor.u32 %v760_v16, %v758_v19  ;;  %v759_v31 = vsel %vm739_vm4, %v754_v22, %v758_v19  ;;  %v7800_v22 = vld [vmem:[%s8833_s1 + $0x6] sm:$0x3] }
  0x3b   : > { %v3043_v21 = vsel %vm3030_vm3, %v3040_v61, %v3042_v12  ;;  %v3047_v42 = vsel %vm3030_vm3, %v3044_v14, %v3046_v29  ;;  %v7310_v61 = vld [vmem:[%s7632_s13 + $0x70] sm:$0xff]  }
  0x3c   : > { %v767_v34 = vsel %vm739_vm4, %v762_v25, %v766_v26 }
  0x40   : > { %6586 = vmatmul.mubr.msk.bf16.gmra.mrb[16].mxu1 %vm335_vm1, %v7279_v23  ;;  %6734 = vmatmul.mubr.msk.bf16.gmra.mrb[12].mxu0 %vm335_vm1, %v2465_v30  ;;  %v7302_v23 = vld [vmem:[%s7632_s13 + $0x50] sm:$0xff]   ;;  %v772_v30 = vshll.u32 %v7305_v20, 16 }
  0x41   : > { %6589 = vmatprep.mubr.msk.bf16.mxu1 %vm335_vm1, %v7281_v24  ;;  %6737 = vmatprep.mubr.msk.bf16.mxu0 %vm335_vm1, %v2474_v33  ;;  %v3045_v24 = vsel %vm3030_vm3, %v3042_v12, %v3044_v14  ;;  %v3048_v32 = vrot.slane %v7302_v23, 2  ;;  %v768_v33 = vshrl.u32 %v7303_v6, 16  ;;  %v3056_v6 = vrot.slane %v7310_v61, 2  ;;  %v7312_v12 = vld [vmem:[%s7632_s13 + $0x78] sm:$0xff]   ;;  %v7317_v14 = vld [vmem:[%s7632_s13 + $0x50] sm:$0xff]  }
  0x42   : > { %v774_v39 = vrot.slane %v772_v30, 1  ;;  %v820_v23 = vshll.u32 %v7317_v14, 16 }
  0x48   : > { %6590 = vmatmul.mubr.msk.bf16.gmra.mrb[20].mxu1 %vm335_vm1, %v7283_v35  ;;  %6738 = vmatmul.mubr.msk.bf16.gmra.mrb[16].mxu0 %vm335_vm1, %v2483_v41  ;;  %v776_v35 = vshrl.u32 %v7305_v20, 16  ;;  %v7309_v41 = vld [vmem:[%s7632_s13 + $0x30] sm:$0xff]   ;;  %v814_v20 = vrot.slane %v812_v11, 1  ;;  %v7325_v11 = vld [vmem:[%s7632_s13 + $0x20] sm:$0xff]  }
  0x49   : > { %6593 = vmatprep.mubr.msk.bf16.mxu1 %vm335_vm1, %v7286_v37  ;;  %6759 = vmatprep.mubr.msk.bf16.mxu0 %vm335_vm1, %v3033_v43  ;;  %v780_v37 = vshll.u32 %v7307_v27, 16  ;;  %v770_v43 = vor.u32 %v768_v33, %v766_v26  ;;  %v788_v50 = vshll.u32 %v7309_v41, 16  ;;  %v792_v53 = vshrl.u32 %v7309_v41, 16  ;;  %v7321_v33 = vld [vmem:[%s7632_s13 + $0x60] sm:$0xff]   ;;  %v7324_v41 = vld [vmem:[%s7632_s13 + $0x68] sm:$0xff]  }
  0x4a   : > { %v778_v46 = vor.u32 %v776_v35, %v774_v39  ;;  %v3060_v26 = vrot.slane %v7314_v17, 2  ;;  %v7332_v17 = vld [vmem:[%s7632_s13 + $0x88] sm:$0xff]  }
  0x4b   : > { %v790_v58 = vrot.slane %v788_v50, 1  ;;  %v844_v50 = vshll.u32 %v7324_v41, 16 }
  0x4d   : > { %v794_v63 = vor.u32 %v792_v53, %v790_v58 }
  0x50   : > { %6594 = vmatmul.mubr.msk.bf16.gmra.mrb[24].mxu1 %vm335_vm1, %v7288_v45  ;;  %6760 = vmatmul.mubr.msk.bf16.vlgmr.msra.gmra.mrb[0].mxu0 %vm335_vm1, %v3035_v51  ;;  %v3049_v45 = vsel %vm3030_vm3, %v3046_v29, %v3048_v32  ;;  %v775_v51 = vsel %vm739_vm4, %v770_v43, %v774_v39  ;;  %v824_v29 = vshrl.u32 %v7317_v14, 16  ;;  %v836_v43 = vshll.u32 %v7321_v33, 16 }
  0x51   : > { %6597 = vmatprep.mubr.msk.bf16.mxu1 %vm335_vm1, %v7290_v47  ;;  %6796 = vmatpush3.bf16.msra.mxu0 %v3634_v52  ;;  %v782_v47 = vrot.slane %v780_v37, 1  ;;  %v784_v52 = vshrl.u32 %v7307_v27, 16  ;;  %v816_v27 = vshrl.u32 %v7315_v1, 16  ;;  %v7318_v37 = vld [vmem:[%s7632_s13 + $0x90] sm:$0xff]   ;;  %v848_v1 = vshrl.u32 %v7324_v41, 16 }
  0x52   : > { %6763 = vmatprep.mubr.msk.bf16.mxu0 %vm335_vm1, %v3037_v54  ;;  %7207 = vmatprep.subr.msk.bf16.mxu0 %vm390_vm0, %v7731_v57  ;;  %v796_v54 = vshll.u32 %v7311_v44, 16 }
  0x53   : > { %v783_v55 = vsel %vm739_vm4, %v778_v46, %v782_v47  ;;  %v786_v60 = vor.u32 %v784_v52, %v782_v47  ;;  %v818_v35 = vor.u32 %v816_v27, %v814_v20  ;;  %v7326_v52 = vld [vmem:[%s7632_s13 + $0x70] sm:$0xff]  }
  0x54   : > { %v798_v0 = vrot.slane %v796_v54, 1  ;;  %v7329_v27 = vld [vmem:[%s7632_s13 + $0x30] sm:$0xff]  }
  0x55   : > { %v791_v5 = vsel %vm739_vm4, %v786_v60, %v790_v58  ;;  %v7322_v58 = vld [vmem:[%s7632_s13 + $0x10] sm:$0xfc]   ;;  %v7328_v60 = vld [vmem:[%s7632_s13 + $0x78] sm:$0xff]  }
  0x56   : > { %v799_v9 = vsel %vm739_vm4, %v794_v63, %v798_v0 }
  0x58   : > { %6598 = vmatmul.mubr.msk.bf16.gmra.mrb[28].mxu1 %vm335_vm1, %v7292_v59  ;;  %6764 = vmatmul.mubr.msk.bf16.gmra.mrb[4].mxu0 %vm335_vm1, %v3039_v2  ;;  %v7313_v59 = vld [vmem:[%s7632_s13 + $0x40] sm:$0xff]   ;;  %v3054_v2 = vrot.slane %v7308_v56, 2 }
  0x59   : > { %6601 = vmatprep.mubr.msk.bf16.mxu1 %vm335_vm1, %v7294_v40  ;;  %6767 = vmatprep.mubr.msk.bf16.mxu0 %vm335_vm1, %v3041_v8  ;;  %v3051_v40 = vsel %vm3030_vm3, %v3048_v32, %v3050_v48  ;;  %v804_v4 = vshll.u32 %v7313_v59, 16  ;;  %v800_v8 = vshrl.u32 %v7311_v44, 16  ;;  %v822_v32 = vrot.slane %v820_v23, 1  ;;  %v7320_v48 = vld [vmem:[%s7632_s13 + $0x98] ss:$0 sps:$4 sm:$0x33]  }
  0x5a   : > { %v3057_v18 = vsel %vm3030_vm3, %v3054_v2, %v3056_v6  ;;  %v3066_v61 = vrot.slane %v7320_v48, 2  ;;  %v864_v23 = vshrl.u32 %v7328_v60, 16 }
  0x5b   : > { %v806_v13 = vrot.slane %v804_v4, 1  ;;  %v802_v16 = vor.u32 %v800_v8, %v798_v0  ;;  %v826_v39 = vor.u32 %v824_v29, %v822_v32  ;;  %v823_v44 = vsel %vm739_vm4, %v818_v35, %v822_v32  ;;  %v7330_v8 = vld [vmem:[%s7632_s13 + $0x80] sm:$0xff]   ;;  %v7334_v29 = vld [vmem:[%s7632_s13 + $0x90] ss:$0 sps:$4 sm:$0x11]   ;;  %v7331_v32 = vld [vmem:[%s7632_s13 + $0x38] sm:$0xff]  }
  0x5c   : > { %v3551_v41 = vrot.slane %v7331_v32, 2  ;;  %v7351_v32 = vld [vmem:[%s7632_s13 + $0x40] sm:$0xff]  }
  0x5d   : > { %v807_v25 = vsel %vm739_vm4, %v802_v16, %v806_v13 }
  0x60   : > { %6602 = vmatmul.mubr.msk.bf16.gmra.mrb[32].mxu1 %vm335_vm1, %v7296_v10  ;;  %6768 = vmatmul.mubr.msk.bf16.gmra.mrb[8].mxu0 %vm335_vm1, %v3043_v21  ;;  %v808_v10 = vshrl.u32 %v7313_v59, 16  ;;  %v7319_v21 = vld [vmem:[%s7632_s13 + $0x58] sm:$0xff]  }
  0x61   : > { %6607 = vmatprep.mubr.msk.bf16.mxu1 %vm335_vm1, %v751_v15  ;;  %6771 = vmatprep.mubr.msk.bf16.mxu0 %vm335_vm1, %v3045_v24  ;;  %v3055_v15 = vsel %vm3030_vm3, %v3052_v49, %v3054_v2  ;;  %v3058_v24 = vrot.slane %v7312_v12, 2  ;;  %v828_v30 = vshll.u32 %v7319_v21, 16  ;;  %v832_v46 = vshrl.u32 %v7319_v21, 16 }
  0x62   : > { %v810_v19 = vor.u32 %v808_v10, %v806_v13  ;;  %v840_v49 = vshrl.u32 %v7321_v33, 16  ;;  %v3542_v2 = vrot.slane %v7322_v58, 2  ;;  %v7327_v13 = vld [vmem:[%s7632_s13 + $0x28] sm:$0xff]   ;;  %v4279_v33 = vsel %vm390_vm0, %v7731_v57, 0 }
  0x63   : > { %v3061_v38 = vsel %vm3030_vm3, %v3058_v24, %v3060_v26  ;;  %v830_v7 = vrot.slane %v828_v30, 1  ;;  %v3547_v21 = vrot.slane %v7327_v13, 2 }
  0x65   : > { %v831_v47 = vsel %vm739_vm4, %v826_v39, %v830_v7  ;;  %v834_v54 = vor.u32 %v832_v46, %v830_v7  ;;  %v884_v39 = vshll.u32 %v7334_v29, 16  ;;  %v3549_v7 = vrot.slane %v7329_v27, 2  ;;  %v7333_v46 = vld [vmem:[%s7632_s13 + $0x40] sm:$0xff]  }
  0x67   : > { %v3550_v48 = vsel %vm3030_vm3, %v3547_v21, %v3549_v7 }
  0x68   : > { %6608 = vmatmul.mubr.msk.bf16.vlgmr.msra.gmra.mrb[0].mxu1 %vm335_vm1, %v759_v31  ;;  %6772 = vmatmul.mubr.msk.bf16.gmra.mrb[12].mxu0 %vm335_vm1, %v3047_v42  ;;  %v7316_v31 = vld [vmem:[%s7632_s13 + $0x88] sm:$0xff]  }
  0x69   : > { %6611 = vmatprep.mubr.msk.bf16.mxu1 %vm335_vm1, %v767_v34  ;;  %6644 = vmatpush3.bf16.msra.mxu1 %v1455_v28  ;;  %v815_v28 = vsel %vm739_vm4, %v810_v19, %v814_v20  ;;  %v3059_v34 = vsel %vm3030_vm3, %v3056_v6, %v3058_v24  ;;  %v3062_v42 = vrot.slane %v7316_v31, 2  ;;  %v860_v6 = vshll.u32 %v7328_v60, 16  ;;  %v7338_v60 = vld [vmem:[%s7632_s13 + $0x50] sm:$0xff]  }
  0x6a   : > { %6775 = vmatprep.mubr.msk.bf16.mxu0 %vm335_vm1, %v3049_v45  ;;  %7202 = vmatprep.subr.msk.bf16.mxu1 %vm390_vm0, %v7800_v22  ;;  %v3064_v45 = vrot.slane %v7318_v37, 2  ;;  %v3545_v19 = vrot.slane %v7325_v11, 2 }
  0x6b   : > { %v3063_v53 = vsel %vm3030_vm3, %v3060_v26, %v3062_v42  ;;  %v862_v16 = vrot.slane %v860_v6, 1  ;;  %v876_v26 = vshll.u32 %v7332_v17, 16  ;;  %v7343_v6 = vld [vmem:[%s7632_s13 + $0x20] sm:$0xff]  }
  0x6c   : > { %v3065_v56 = vsel %vm3030_vm3, %v3062_v42, %v3064_v45  ;;  %v3067_v10 = vsel %vm3030_vm3, %v3064_v45, %v3066_v61  ;;  %v880_v42 = vshrl.u32 %v7332_v17, 16  ;;  %v7336_v45 = vld [vmem:[%s7632_s13] sm:$0xfe]   ;;  %v1370_v13 = vrot.slane %v7343_v6, 1 }
  0x6d   : > { %v866_v31 = vor.u32 %v864_v23, %v862_v16  ;;  %v878_v37 = vrot.slane %v876_v26, 1  ;;  %v7349_v23 = vld [vmem:[%s7632_s13 + $0x38] sm:$0xff]  }
  0x6e   : > { %v1376_v29 = vrot.slane %v7349_v23, 1  ;;  %v5120_v23 = vld [vmem:[%s8834_s2 + $0x30] sm:$0xff] }
  0x70   : > { %6612 = vmatmul.mubr.msk.bf16.gmra.mrb[4].mxu1 %vm335_vm1, %v775_v51  ;;  %6776 = vmatmul.mubr.msk.bf16.gmra.mrb[16].mxu0 %vm335_vm1, %v3051_v40  ;;  %v838_v51 = vrot.slane %v836_v43, 1  ;;  %v846_v40 = vrot.slane %v844_v50, 1  ;;  %v7337_v43 = vld [vmem:[%s7632_s13 + $0x8] sm:$0xff]   ;;  %v3552_v50 = vsel %vm3030_vm3, %v3549_v7, %v3551_v41  ;;  %v1378_v7 = vrot.slane %v7351_v32, 1 }
  0x71   : > { %6615 = vmatprep.mubr.msk.bf16.mxu1 %vm335_vm1, %v783_v55  ;;  %6779 = vmatprep.mubr.msk.bf16.mxu0 %vm335_vm1, %v3053_v62  ;;  %v7323_v55 = vld [vmem:[%s7632_s13 + $0x18] sm:$0xff]   ;;  %v852_v62 = vshll.u32 %v7326_v52, 16 }
  0x72   : > { %v842_v59 = vor.u32 %v840_v49, %v838_v51  ;;  %v839_v63 = vsel %vm739_vm4, %v834_v54, %v838_v51  ;;  %v3543_v0 = vrot.slane %v7323_v55, 2  ;;  %v850_v12 = vor.u32 %v848_v1, %v846_v40  ;;  %v7335_v51 = vld [vmem:[%s7632_s13 + $0x48] sm:$0xff]  }
  0x73   : > { %v882_v49 = vor.u32 %v880_v42, %v878_v37  ;;  %v3553_v54 = vrot.slane %v7333_v46, 2  ;;  %v3555_v58 = vrot.slane %v7335_v51, 2  ;;  %v7355_v46 = vld [vmem:[%s7632_s13 + $0x50] sm:$0xff]   ;;  %v7361_v51 = vld [vmem:[%s7632_s13 + $0x18] sm:$0xff]  }
  0x74   : > { %v847_v4 = vsel %vm739_vm4, %v842_v59, %v846_v40  ;;  %v3544_v14 = vsel %vm3030_vm3, %v3542_v2, %v3543_v0  ;;  %v3546_v30 = vsel %vm3030_vm3, %v3543_v0, %v3545_v19  ;;  %v7341_v40 = vld [vmem:[%s7632_s13 + $0x18] sm:$0xff]   ;;  %v3557_v2 = vrot.slane %v7338_v60, 2  ;;  %v5116_v60 = vld [vmem:[%s8834_s2 + $0x10] sm:$0xff] }
  0x75   : > { %v3554_v61 = vsel %vm3030_vm3, %v3551_v41, %v3553_v54  ;;  %v3556_v0 = vsel %vm3030_vm3, %v3553_v54, %v3555_v58  ;;  %v1368_v1 = vrot.slane %v7341_v40, 1  ;;  %v7352_v41 = vld [vmem:[%s7632_s13 + $0x88] sm:$0xff]   ;;  %v7360_v54 = vld [vmem:[%s7632_s13 + $0x10] sm:$0xfc]   ;;  %v7359_v40 = vld [vmem:[%s7632_s13 + $0x60] sm:$0xff]  }
  0x76   : > { %v3558_v11 = vsel %vm3030_vm3, %v3555_v58, %v3557_v2  ;;  %v7944_v58 = vld [vmem:[%s7632_s13 + $0x98] sm:$0xff]  }
  0x78   : > { %6616 = vmatmul.mubr.msk.bf16.gmra.mrb[8].mxu1 %vm335_vm1, %v791_v5  ;;  %6780 = vmatmul.mubr.msk.bf16.gmra.mrb[20].mxu0 %vm335_vm1, %v3055_v15  ;;  %v856_v5 = vshrl.u32 %v7326_v52, 16  ;;  %v1363_v52 = vrot.slane %v7336_v45, 1  ;;  %v1379_v45 = vsel %vm1362_vm5, %v1376_v29, %v1378_v7 }
  0x79   : > { %6619 = vmatprep.mubr.msk.bf16.mxu1 %vm335_vm1, %v799_v9  ;;  %6783 = vmatprep.mubr.msk.bf16.mxu0 %vm335_vm1, %v3057_v18  ;;  %v854_v9 = vrot.slane %v852_v62, 1  ;;  %v868_v18 = vshll.u32 %v7330_v8, 16 }
  0x7b   : > { %v858_v15 = vor.u32 %v856_v5, %v854_v9  ;;  %v855_v20 = vsel %vm739_vm4, %v850_v12, %v854_v9  ;;  %v7345_v9 = vld [vmem:[%s7632_s13 + $0x28] sm:$0xff]   ;;  %v7342_v12 = vld [vmem:[%s7632_s13 + $0x60] sm:$0xff]  }
  0x7c   : > { %v3561_v17 = vrot.slane %v7342_v12, 2  ;;  %v5118_v12 = vld [vmem:[%s8834_s2 + $0x20] sm:$0xff] }
  0x7d   : > { %v863_v24 = vsel %vm739_vm4, %v858_v15, %v862_v16  ;;  %v7344_v15 = vld [vmem:[%s7632_s13 + $0x68] sm:$0xff]   ;;  %v1372_v16 = vrot.slane %v7345_v9, 1  ;;  %v4058_v9 = vshll.u32 %v7360_v54, 16 }
  0x80   : > { %6620 = vmatmul.mubr.msk.bf16.gmra.mrb[12].mxu1 %vm335_vm1, %v807_v25  ;;  %6784 = vmatmul.mubr.msk.bf16.gmra.mrb[24].mxu0 %vm335_vm1, %v3059_v34  ;;  %v872_v25 = vshrl.u32 %v7330_v8, 16  ;;  %v3548_v34 = vsel %vm3030_vm3, %v3545_v19, %v3547_v21  ;;  %v7347_v19 = vld [vmem:[%s7632_s13 + $0x30] sm:$0xff]   ;;  %v1373_v21 = vsel %vm1362_vm5, %v1370_v13, %v1372_v16 }
  0x81   : > { %6623 = vmatprep.mubr.msk.bf16.mxu1 %vm335_vm1, %v815_v28  ;;  %6787 = vmatprep.mubr.msk.bf16.mxu0 %vm335_vm1, %v3061_v38  ;;  %v870_v28 = vrot.slane %v868_v18, 1  ;;  %v7857_v38 = vld [vmem:[%s8833_s1 + $0x10] sm:$0x3]  ;;  %v1371_v18 = vsel %vm1362_vm5, %v1368_v1, %v1370_v13  ;;  %v1374_v26 = vrot.slane %v7347_v19, 1 }
  0x83   : > { %v874_v35 = vor.u32 %v872_v25, %v870_v28  ;;  %v871_v57 = vsel %vm739_vm4, %v866_v31, %v870_v28  ;;  %v7346_v25 = vld [vmem:[%s7632_s13 + $0x70] sm:$0xff]   ;;  %v7348_v28 = vld [vmem:[%s7632_s13 + $0x78] sm:$0xff]   ;;  %v1375_v31 = vsel %vm1362_vm5, %v1372_v16, %v1374_v26  ;;  %v5119_v16 = vld [vmem:[%s8834_s2 + $0x28] sm:$0xff] }
  0x88   : > { %6624 = vmatmul.mubr.msk.bf16.gmra.mrb[16].mxu1 %vm335_vm1, %v823_v44  ;;  %6788 = vmatmul.mubr.msk.bf16.gmra.mrb[28].mxu0 %vm335_vm1, %v3063_v53  ;;  %v879_v44 = vsel %vm739_vm4, %v874_v35, %v878_v37  ;;  %v1364_v53 = vrot.slane %v7337_v43, 1  ;;  %v7353_v35 = vld [vmem:[%s7632_s13 + $0x48] sm:$0xff]   ;;  %v7350_v37 = vld [vmem:[%s7632_s13 + $0x80] sm:$0xff]   ;;  %v7528_v43 = vmov 0  }
  0x89   : > { %6627 = vmatprep.mubr.msk.bf16.mxu1 %vm335_vm1, %v831_v47  ;;  %6791 = vmatprep.mubr.msk.bf16.mxu0 %vm335_vm1, %v3065_v56  ;;  %v886_v47 = vrot.slane %v884_v39, 1  ;;  %v7339_v56 = vld [vmem:[%s7632_s13 + $0x10] sm:$0xff]   ;;  %v1380_v42 = vrot.slane %v7353_v35, 1  ;;  %v7366_v35 = vld [vmem:[%s7632_s13 + $0x78] sm:$0xff]  }
  0x8a   : > { %v1365_v59 = vsel %vm1362_vm5, %v1363_v52, %v1364_v53  ;;  %v1366_v62 = vrot.slane %v7339_v56, 1  ;;  %7259 = vset.pattern.permute.xlu0 %v7528_v43  ;;  %7260 = vset.pattern.permute.xlu1 %v7528_v43 }
  0x8b   : > { %v887_v55 = vsel %vm739_vm4, %v882_v49, %v886_v47  ;;  %v3571_v47 = vrot.slane %v7352_v41, 2  ;;  %v7357_v49 = vld [vmem:[%s7632_s13 + $0x58] sm:$0xff]   ;;  %5162 = vperm.xlu1 %7260, %v5116_v60   ;;  %v5123_v41 = vld [vmem:[%s8834_s2 + $0x48] sm:$0xff] }
  0x8c   : > { %v1369_v8 = vsel %vm1362_vm5, %v1366_v62, %v1368_v1  ;;  %v7370_v60 = vld [vmem:[%s7632_s13 + $0x88] sm:$0xff]  }
  0x90   : > { %6628 = vmatmul.mubr.msk.bf16.gmra.mrb[20].mxu1 %vm335_vm1, %v839_v63  ;;  %6792 = vmatmul.mubr.msk.bf16.gmra.mrb[32].mxu0 %vm335_vm1, %v3067_v10  ;;  %v7340_v63 = vld [vmem:[%s7632_s13 + $0x58] sm:$0xff]   ;;  %v1966_v10 = vsel %vm390_vm0, %v7800_v22, 0  ;;  %v7431_v22 = vld [vmem:[%s8833_s1 + $0x8] sm:$0x3] }
  0x91   : > { %6631 = vmatprep.mubr.msk.bf16.mxu1 %vm335_vm1, %v847_v4  ;;  %6797 = vmatprep.mubr.msk.bf16.mxu0 %vm335_vm1, %v3544_v14  ;;  %v1367_v4 = vsel %vm1362_vm5, %v1364_v53, %v1366_v62  ;;  %v3559_v5 = vrot.slane %v7340_v63, 2  ;;  %v1382_v53 = vrot.slane %v7355_v46, 1  ;;  %v5115_v62 = vld [vmem:[%s8834_s2 + $0x8] sm:$0xff]  ;;  %v4063_v63 = vshrl.u32 %v7361_v51, 16 }
  0x93   : > { %v3560_v14 = vsel %vm3030_vm3, %v3557_v2, %v3559_v5  ;;  %v1383_v1 = vsel %vm1362_vm5, %v1380_v42, %v1382_v53  ;;  %v4055_v2 = vshrl.u32 %v7360_v54, 16  ;;  %v4065_v13 = vrot.slane %v4063_v63, 2 }
  0x98   : > { %6632 = vmatmul.mubr.msk.bf16.gmra.mrb[24].mxu1 %vm335_vm1, %v855_v20  ;;  %6798 = vmatmul.mubr.msk.bf16.vlgmr.msra.gmra.mrb[0].mxu0 %vm335_vm1, %v3546_v30  ;;  %v3563_v20 = vrot.slane %v7344_v15, 2  ;;  %v3565_v30 = vrot.slane %v7346_v25, 2  ;;  %v7363_v15 = vld [vmem:[%s7632_s13 + $0x20] sm:$0xff]  }
  0x99   : > { %6635 = vmatprep.mubr.msk.bf16.mxu1 %vm335_vm1, %v863_v24  ;;  %6834 = vmatpush3.bf16.msra.mxu0 %v4279_v33  ;;  %v3562_v24 = vsel %vm3030_vm3, %v3559_v5, %v3561_v17  ;;  %v3567_v33 = vrot.slane %v7348_v28, 2  ;;  %v3575_v5 = vrot.slane %v7944_v58, 2  ;;  %v4072_v25 = vshrl.u32 %v7363_v15, 16 }
  0x9a   : > { %6801 = vmatprep.mubr.msk.bf16.mxu0 %vm335_vm1, %v3548_v34  ;;  %7208 = vmatprep.subr.msk.bf16.mxu0 %vm390_vm0, %v7857_v38  ;;  %v3564_v27 = vsel %vm3030_vm3, %v3561_v17, %v3563_v20  ;;  %v1377_v34 = vsel %vm1362_vm5, %v1374_v26, %v1376_v29  ;;  %v3566_v39 = vsel %vm3030_vm3, %v3563_v20, %v3565_v30  ;;  %v4057_v17 = vrot.slane %v4055_v2, 2  ;;  %v7364_v26 = vld [vmem:[%s7632_s13 + $0x70] sm:$0xff]  }
  0x9b   : > { %v4060_v20 = vrot.slane %v4058_v9, 3  ;;  %v4791_v9 = vsel %vm390_vm0, %v7857_v38, 0  ;;  %v5129_v38 = vld [vmem:[%s8834_s2 + $0x78] sm:$0xff] }
  0xa0   : > { %6636 = vmatmul.mubr.msk.bf16.gmra.mrb[28].mxu1 %vm335_vm1, %v871_v57  ;;  %6802 = vmatmul.mubr.msk.bf16.gmra.mrb[4].mxu0 %vm335_vm1, %v3550_v48  ;;  %v3568_v57 = vsel %vm3030_vm3, %v3565_v30, %v3567_v33  ;;  %v1381_v48 = vsel %vm1362_vm5, %v1378_v7, %v1380_v42  ;;  %v4075_v30 = vshll.u32 %v7363_v15, 16  ;;  %v1390_v7 = vrot.slane %v7364_v26, 1  ;;  %v5131_v26 = vld [vmem:[%s8834_s2 + $0x88] sm:$0xff] }
  0xa1   : > { %6639 = vmatprep.mubr.msk.bf16.mxu1 %vm335_vm1, %v879_v44  ;;  %6805 = vmatprep.mubr.msk.bf16.mxu0 %vm335_vm1, %v3552_v50  ;;  %v3569_v44 = vrot.slane %v7350_v37, 2  ;;  %v7354_v50 = vld [vmem:[%s7632_s13 + $0x90] sm:$0xff]   ;;  %v5122_v37 = vld [vmem:[%s8834_s2 + $0x40] sm:$0xff] }
  0xa2   : > { %v4077_v43 = vrot.slane %v4075_v30, 3 }
  0xa3   : > { %v3570_v52 = vsel %vm3030_vm3, %v3567_v33, %v3569_v44  ;;  %v3572_v56 = vsel %vm3030_vm3, %v3569_v44, %v3571_v47  ;;  %v7369_v44 = vld [vmem:[%s7632_s13 + $0x38] sm:$0xff]  }
  0xa4   : > { %v4102_v58 = vshll.u32 %v7369_v44, 16 }
  0xa8   : > { %6640 = vmatmul.mubr.msk.bf16.gmra.mrb[32].mxu1 %vm335_vm1, %v887_v55  ;;  %6806 = vmatmul.mubr.msk.bf16.gmra.mrb[8].mxu0 %vm335_vm1, %v3554_v61  ;;  %v5114_v55 = vld [vmem:[%s8834_s2] sm:$0xff]  ;;  %v3573_v61 = vrot.slane %v7354_v50, 2 }
  0xa9   : > { %6645 = vmatprep.mubr.msk.bf16.mxu1 %vm335_vm1, %v1365_v59  ;;  %6809 = vmatprep.mubr.msk.bf16.mxu0 %vm335_vm1, %v3556_v0  ;;  %v1384_v59 = vrot.slane %v7357_v49, 1  ;;  %v4066_v0 = vshll.u32 %v7361_v51, 16  ;;  %v5124_v49 = vld [vmem:[%s8834_s2 + $0x50] sm:$0xff] }
  0xaa   : > { %5152 = vperm.xlu0 %7259, %v5114_v55   ;;  %v3576_v19 = vsel %vm3030_vm3, %v3573_v61, %v3575_v5 }
  0xab   : > { %v1385_v6 = vsel %vm1362_vm5, %v1382_v53, %v1384_v59  ;;  %v5125_v53 = vld [vmem:[%s8834_s2 + $0x58] sm:$0xff] }
  0xae   : > { %5157 = vperm.xlu0 %7259, %v5115_v62  }
  0xb0   : > { %6646 = vmatmul.mubr.msk.bf16.vlgmr.msra.gmra.mrb[0].mxu1 %vm335_vm1, %v1367_v4  ;;  %6810 = vmatmul.mubr.msk.bf16.gmra.mrb[12].mxu0 %vm335_vm1, %v3558_v11  ;;  %v7957_v4 = vld [vmem:[%s7632_s13 + $0x68] sm:$0xff]   ;;  %v1386_v11 = vrot.slane %v7359_v40, 1 }
  0xb1   : > { %6649 = vmatprep.mubr.msk.bf16.mxu1 %vm335_vm1, %v1369_v8  ;;  %6682 = vmatpush3.bf16.msra.mxu1 %v1966_v10  ;;  %v7358_v8 = vld [vmem:[%s7632_s13 + $0xa0] ss:$0 sps:$4 sm:$0x33]   ;;  %v5117_v10 = vld [vmem:[%s8834_s2 + $0x18] sm:$0xff] }
  0xb2   : > { %7204 = vmatprep.subr.msk.bf16.mxu1 %vm390_vm0, %v7431_v22  ;;  %6813 = vmatprep.mubr.msk.bf16.mxu0 %vm335_vm1, %v3560_v14  ;;  %v4068_v14 = vrot.slane %v4066_v0, 3  ;;  %v3574_v22 = vsel %vm3030_vm3, %v3571_v47, %v3573_v61  ;;  %v1387_v28 = vsel %vm1362_vm5, %v1384_v59, %v1386_v11  ;;  %v5126_v61 = vld [vmem:[%s8834_s2 + $0x60] sm:$0xff] }
  0xb3   : > { %5167 = vperm.xlu1 %7260, %v5117_v10   ;;  %5172 = vperm.xlu0 %7259, %v5118_v12   ;;  %v7371_v0 = vld [vmem:[%s7632_s13 + $0x40] sm:$0xff]   ;;  %v5128_v12 = vld [vmem:[%s8834_s2 + $0x70] sm:$0xff] }
  0xb4   : > { %v4069_v29 = vor.u32 %v4068_v14, %v4065_v13  ;;  %v4108_v14 = vshrl.u32 %v7371_v0, 16  ;;  %v4111_v15 = vshll.u32 %v7371_v0, 16 }
  0xb7   : > { %5177 = vperm.xlu1 %7260, %v5119_v16   ;;  %5182 = vperm.xlu0 %7259, %v5120_v23   ;;  %v7375_v23 = vld [vmem:[%s7632_s13 + $0x10] sm:$0xff]  }
  0xb8   : > { %6650 = vmatmul.mubr.msk.bf16.gmra.mrb[4].mxu1 %vm335_vm1, %v1371_v18  ;;  %6814 = vmatmul.mubr.msk.bf16.gmra.mrb[16].mxu0 %vm335_vm1, %v3562_v24  ;;  %v1388_v18 = vrot.slane %v7957_v4, 1  ;;  %v3577_v24 = vrot.slane %v7358_v8, 2  ;;  %v7373_v8 = vld [vmem:[%s7632_s13 + $0x48] sm:$0xff]  }
  0xb9   : > { %6653 = vmatprep.mubr.msk.bf16.mxu1 %vm335_vm1, %v1373_v21  ;;  %6817 = vmatprep.mubr.msk.bf16.mxu0 %vm335_vm1, %v3564_v27  ;;  %v7365_v21 = vld [vmem:[%s7632_s13 + $0x28] sm:$0xff]   ;;  %v5121_v27 = vld [vmem:[%s8834_s2 + $0x38] sm:$0xff] }
  0xba   : > { %v1389_v32 = vsel %vm1362_vm5, %v1386_v11, %v1388_v18  ;;  %v4081_v33 = vshrl.u32 %v7365_v21, 16  ;;  %v3578_v42 = vsel %vm3030_vm3, %v3575_v5, %v3577_v24  ;;  %v1391_v55 = vsel %vm1362_vm5, %v1388_v18, %v1390_v7  ;;  %v5130_v24 = vld [vmem:[%s8834_s2 + $0x80] sm:$0xff] }
  0xbb   : > { %5187 = vperm.xlu1 %7260, %v5121_v27   ;;  %5192 = vperm.xlu0 %7259, %v5122_v37   ;;  %v1396_v11 = vrot.slane %v7370_v60, 1  ;;  %v4117_v18 = vshrl.u32 %v7373_v8, 16  ;;  %v7378_v37 = vld [vmem:[%s7632_s13 + $0x58] sm:$0xff]  }
  0xbc   : > { %v4083_v46 = vrot.slane %v4081_v33, 2 }
  0xbf   : > { %5197 = vperm.xlu1 %7260, %v5123_v41   ;;  %5202 = vperm.xlu0 %7259, %v5124_v49   ;;  %v7379_v49 = vld [vmem:[%s7632_s13 + $0x20] sm:$0xff]  }
  0xc0   : > { %6654 = vmatmul.mubr.msk.bf16.gmra.mrb[8].mxu1 %vm335_vm1, %v1375_v31  ;;  %6818 = vmatmul.mubr.msk.bf16.gmra.mrb[20].mxu0 %vm335_vm1, %v3566_v39  ;;  %v4061_v31 = vor.u32 %v4060_v20, %v4057_v17  ;;  %v4074_v39 = vrot.slane %v4072_v25, 2  ;;  %v7372_v17 = vld [vmem:[%s7632_s13 + $0x90] ss:$0 sps:$4 sm:$0x11]   ;;  %v1879_v60 = vrot.slane %v7379_v49, 1 }
  0xc1   : > { %6657 = vmatprep.mubr.msk.bf16.mxu1 %vm335_vm1, %v1377_v34  ;;  %6821 = vmatprep.mubr.msk.bf16.mxu0 %vm335_vm1, %v3568_v57  ;;  %v4084_v34 = vshll.u32 %v7365_v21, 16  ;;  %v7367_v57 = vld [vmem:[%s7632_s13 + $0x30] sm:$0xff]   ;;  %v4120_v21 = vshll.u32 %v7373_v8, 16  ;;  %v1398_v30 = vrot.slane %v7372_v17, 1 }
  0xc2   : > { %v4090_v50 = vshrl.u32 %v7367_v57, 16  ;;  %v4093_v51 = vshll.u32 %v7367_v57, 16  ;;  %v4078_v54 = vor.u32 %v4077_v43, %v4074_v39  ;;  %v5132_v39 = vld [vmem:[%s8834_s2 + $0x90] sm:$0xff] }
  0xc3   : > { %v4086_v47 = vrot.slane %v4084_v34, 3  ;;  %5207 = vperm.xlu1 %7260, %v5125_v53   ;;  %5212 = vperm.xlu0 %7259, %v5126_v61   ;;  %v4122_v33 = vrot.slane %v4120_v21, 3  ;;  %v1399_v41 = vsel %vm1362_vm5, %v1396_v11, %v1398_v30  ;;  %v7382_v61 = vld [vmem:[%s7632_s13 + $0x68] sm:$0xff]   ;;  %v7386_v21 = vld [vmem:[%s7632_s13 + $0x78] sm:$0xff]  }
  0xc4   : > { %v4092_v62 = vrot.slane %v4090_v50, 2  ;;  %v4095_v63 = vrot.slane %v4093_v51, 3  ;;  %v4079_v2 = vsel %vm4053_vm6, %v4069_v29, %v4078_v54  ;;  %v5134_v50 = vld [vmem:[%s8834_s2 + $0xa0] sm:$0xff]  ;;  %v5135_v51 = vld [vmem:[%s8834_s2 + $0xa8] sm:$0xff] }
  0xc5   : > { %v4087_v59 = vor.u32 %v4086_v47, %v4083_v46  ;;  %v4135_v47 = vshrl.u32 %v7378_v37, 16 }
  0xc6   : > { %v4096_v13 = vor.u32 %v4095_v63, %v4092_v62  ;;  %v5136_v62 = vld [vmem:[%s8834_s2 + $0xb0] sm:$0xff]  ;;  %v5137_v63 = vld [vmem:[%s8834_s2 + $0xb8] sm:$0xff] }
  0xc7   : > { %v4088_v10 = vsel %vm4053_vm6, %v4078_v54, %v4087_v59  ;;  %5222 = vperm.xlu0 %7259, %v5128_v12   ;;  %v5138_v12 = vld [vmem:[%s8834_s2 + $0xc0] sm:$0xff] }
  0xc8   : > { %6658 = vmatmul.mubr.msk.bf16.gmra.mrb[12].mxu1 %vm335_vm1, %v1379_v45  ;;  %6822 = vmatmul.mubr.msk.bf16.gmra.mrb[24].mxu0 %vm335_vm1, %v3570_v52  ;;  %v4070_v45 = vsel %vm4053_vm6, %v4061_v31, %v4069_v29  ;;  %v7368_v52 = vld [vmem:[%s7632_s13 + $0x80] sm:$0xff]   ;;  %v4097_v25 = vsel %vm4053_vm6, %v4087_v59, %v4096_v13  ;;  %v4113_v29 = vrot.slane %v4111_v15, 3  ;;  %v7376_v31 = vld [vmem:[%s7632_s13 + $0x50] sm:$0xff]   ;;  %v4137_v59 = vrot.slane %v4135_v47, 2 }
  0xc9   : > { %6661 = vmatprep.mubr.msk.bf16.mxu1 %vm335_vm1, %v1381_v48  ;;  %6825 = vmatprep.mubr.msk.bf16.mxu0 %vm335_vm1, %v3572_v56  ;;  %v1392_v48 = vrot.slane %v7366_v35, 1  ;;  %v4099_v56 = vshrl.u32 %v7369_v44, 16  ;;  %v1394_v4 = vrot.slane %v7368_v52, 1  ;;  %v1875_v35 = vrot.slane %v7375_v23, 1  ;;  %v7377_v44 = vld [vmem:[%s7632_s13 + $0x18] sm:$0xff]   ;;  %v5140_v23 = vld [vmem:[%s8834_s2 + $0xd0] sm:$0xff] }
  0xca   : > { %v4129_v43 = vshll.u32 %v7376_v31, 16  ;;  %v5144_v47 = vld [vmem:[%s8834_s2 + $0xf0] sm:$0xff] }
  0xcb   : > { %v1393_v40 = vsel %vm1362_vm5, %v1390_v7, %v1392_v48  ;;  %v4101_v5 = vrot.slane %v4099_v56, 2  ;;  %v1395_v16 = vsel %vm1362_vm5, %v1392_v48, %v1394_v4  ;;  %v1397_v20 = vsel %vm1362_vm5, %v1394_v4, %v1396_v11  ;;  %5232 = vperm.xlu0 %7259, %v5130_v24   ;;  %v5133_v7 = vld [vmem:[%s8834_s2 + $0x98] sm:$0xff]  ;;  %v7380_v56 = vld [vmem:[%s7632_s13 + $0x60] sm:$0xff]   ;;  %v7383_v11 = vld [vmem:[%s7632_s13 + $0x30] sm:$0xff]  }
  0xcc   : > { %v4138_v48 = vshll.u32 %v7378_v37, 16  ;;  %v4131_v54 = vrot.slane %v4129_v43, 3  ;;  %v4147_v4 = vshll.u32 %v7380_v56, 16 }
  0xcf   : > { %5242 = vperm.xlu0 %7259, %v5132_v39  }
  0xd0   : > { %6662 = vmatmul.mubr.msk.bf16.gmra.mrb[16].mxu1 %vm335_vm1, %v1383_v1  ;;  %6826 = vmatmul.mubr.msk.bf16.gmra.mrb[28].mxu0 %vm335_vm1, %v3574_v22  ;;  %v5127_v1 = vld [vmem:[%s8834_s2 + $0x68] sm:$0xff] }
  0xd1   : > { %6665 = vmatprep.mubr.msk.bf16.mxu1 %vm335_vm1, %v1385_v6  ;;  %6829 = vmatprep.mubr.msk.bf16.mxu0 %vm335_vm1, %v3576_v19  ;;  %v4104_v6 = vrot.slane %v4102_v58, 3  ;;  %v7374_v19 = vld [vmem:[%s7632_s13 + $0x8] sm:$0xfe]  }
  0xd2   : > { %5217 = vperm.xlu1 %7260, %v5127_v1   ;;  %v1874_v34 = vrot.slane %v7374_v19, 1 }
  0xd3   : > { %v4105_v22 = vor.u32 %v4104_v6, %v4101_v5  ;;  %5252 = vperm.xlu0 %7259, %v5134_v50   ;;  %v7381_v5 = vld [vmem:[%s7632_s13 + $0x28] sm:$0xff]  }
  0xd4   : > { %v1876_v46 = vsel %vm1362_vm5, %v1874_v34, %v1875_v35  ;;  %v5142_v34 = vld [vmem:[%s8834_s2 + $0xe0] sm:$0xff] }
  0xd5   : > { %v4106_v27 = vsel %vm4053_vm6, %v4096_v13, %v4105_v22  ;;  %v5139_v13 = vld [vmem:[%s8834_s2 + $0xc8] sm:$0xff] }
  0xd6   : > { %5227 = vperm.xlu1 %7260, %v5129_v38   ;;  %v4149_v38 = vrot.slane %v4147_v4, 3 }
  0xd7   : > { %5262 = vperm.xlu0 %7259, %v5136_v62  }
  0xd8   : > { %6666 = vmatmul.mubr.msk.bf16.gmra.mrb[20].mxu1 %vm335_vm1, %v1387_v28  ;;  %6830 = vmatmul.mubr.msk.bf16.gmra.mrb[32].mxu0 %vm335_vm1, %v3578_v42  ;;  %v4110_v28 = vrot.slane %v4108_v14, 2  ;;  %v4126_v42 = vshrl.u32 %v7376_v31, 16  ;;  %v4171_v31 = vshrl.u32 %v7386_v21, 16 }
  0xd9   : > { %6669 = vmatprep.mubr.msk.bf16.mxu1 %vm335_vm1, %v1389_v32  ;;  %6835 = vmatprep.mubr.msk.bf16.mxu0 %vm335_vm1, %v4070_v45  ;;  %v4119_v32 = vrot.slane %v4117_v18, 2 }
  0xda   : > { %5237 = vperm.xlu1 %7260, %v5131_v26   ;;  %v4114_v57 = vor.u32 %v4113_v29, %v4110_v28  ;;  %v4128_v53 = vrot.slane %v4126_v42, 2  ;;  %v7385_v28 = vld [vmem:[%s7632_s13 + $0x38] sm:$0xff]   ;;  %v4173_v43 = vrot.slane %v4171_v31, 2 }
  0xdb   : > { %v4123_v45 = vor.u32 %v4122_v33, %v4119_v32  ;;  %5272 = vperm.xlu0 %7259, %v5138_v12   ;;  %v4174_v32 = vshll.u32 %v7386_v21, 16  ;;  %v7387_v33 = vld [vmem:[%s7632_s13 + $0x40] sm:$0xff]  }
  0xdc   : > { %v4115_v52 = vsel %vm4053_vm6, %v4105_v22, %v4114_v57  ;;  %v4132_v0 = vor.u32 %v4131_v54, %v4128_v53  ;;  %v7384_v22 = vld [vmem:[%s7632_s13 + $0x70] sm:$0xff]   ;;  %v7389_v53 = vld [vmem:[%s7632_s13 + $0x48] sm:$0xff]  }
  0xdd   : > { %v4124_v58 = vsel %vm4053_vm6, %v4114_v57, %v4123_v45  ;;  %v4162_v26 = vshrl.u32 %v7384_v22, 16  ;;  %v1885_v57 = vrot.slane %v7385_v28, 1 }
  0xde   : > { %5247 = vperm.xlu1 %7260, %v5133_v7   ;;  %v4133_v14 = vsel %vm4053_vm6, %v4123_v45, %v4132_v0  ;;  %v1887_v45 = vrot.slane %v7387_v33, 1 }
  0xdf   : > { %5282 = vperm.xlu0 %7259, %v5140_v23   ;;  %v4164_v39 = vrot.slane %v4162_v26, 2 }
  0xe0   : > { %6670 = vmatmul.mubr.msk.bf16.gmra.mrb[24].mxu1 %vm335_vm1, %v1391_v55  ;;  %6836 = vmatmul.mubr.msk.bf16.vlgmr.msra.gmra.mrb[0].mxu0 %vm335_vm1, %v4079_v2  ;;  %v1877_v55 = vrot.slane %v7377_v44, 1  ;;  %v4144_v2 = vshrl.u32 %v7380_v56, 16  ;;  %v4176_v44 = vrot.slane %v4174_v32, 3  ;;  %v7397_v32 = vld [vmem:[%s7632_s13 + $0x68] sm:$0xff]  }
  0xe1   : > { %6673 = vmatprep.mubr.msk.bf16.mxu1 %vm335_vm1, %v1393_v40  ;;  %6872 = vmatpush3.bf16.msra.mxu0 %v4791_v9  ;;  %v4140_v40 = vrot.slane %v4138_v48, 3  ;;  %v4153_v9 = vshrl.u32 %v7382_v61, 16  ;;  %v5145_v48 = vld [vmem:[%s8834_s2 + $0xf8] sm:$0xff] }
  0xe2   : > { %6839 = vmatprep.mubr.msk.bf16.mxu0 %vm335_vm1, %v4088_v10  ;;  %5257 = vperm.xlu1 %7260, %v5135_v51   ;;  %v1878_v1 = vsel %vm1362_vm5, %v1875_v35, %v1877_v55  ;;  %v1880_v8 = vsel %vm1362_vm5, %v1877_v55, %v1879_v60  ;;  %v4156_v10 = vshll.u32 %v7382_v61, 16  ;;  %v4146_v15 = vrot.slane %v4144_v2, 2  ;;  %v5143_v35 = vld [vmem:[%s8834_s2 + $0xe8] sm:$0xff] }
  0xe3   : > { %v4141_v6 = vor.u32 %v4140_v40, %v4137_v59  ;;  %v4155_v18 = vrot.slane %v4153_v9, 2  ;;  %5292 = vperm.xlu0 %7259, %v5142_v34   ;;  %v4177_v54 = vor.u32 %v4176_v44, %v4173_v43  ;;  %v1888_v55 = vsel %vm1362_vm5, %v1885_v57, %v1887_v45  ;;  %v7391_v59 = vld [vmem:[%s7632_s13 + $0x50] sm:$0xff]   ;;  %v5146_v40 = vld [vmem:[%s8834_s2 + $0x100] sm:$0xff]  ;;  %v7399_v43 = vld [vmem:[%s7632_s13 + $0x18] sm:$0xff]  }
  0xe4   : > { %v4158_v19 = vrot.slane %v4156_v10, 3  ;;  %v4150_v24 = vor.u32 %v4149_v38, %v4146_v15  ;;  %v5148_v9 = vld [vmem:[%s8834_s2 + $0x110] sm:$0xff]  ;;  %v5149_v10 = vld [vmem:[%s8834_s2 + $0x118] sm:$0xff] }
  0xe5   : > { %v4142_v17 = vsel %vm4053_vm6, %v4132_v0, %v4141_v6  ;;  %v1889_v0 = vrot.slane %v7389_v53, 1  ;;  %v7393_v15 = vld [vmem:[%s7632_s13 + $0x58] sm:$0xff]   ;;  %v7401_v53 = vld [vmem:[%s7632_s13 + $0x20] sm:$0xff]  }
  0xe6   : > { %5267 = vperm.xlu1 %7260, %v5137_v63   ;;  %v4159_v29 = vor.u32 %v4158_v19, %v4155_v18  ;;  %v4151_v37 = vsel %vm4053_vm6, %v4141_v6, %v4150_v24  ;;  %v1891_v6 = vrot.slane %v7391_v59, 1  ;;  %v7395_v18 = vld [vmem:[%s7632_s13 + $0x60] sm:$0xff]   ;;  %v1893_v23 = vrot.slane %v7393_v15, 1 }
  0xe7   : > { %5302 = vperm.xlu0 %7259, %v5144_v47   ;;  %v1890_v12 = vsel %vm1362_vm5, %v1887_v45, %v1889_v0  ;;  %v7402_v47 = vld [vmem:[%s7632_s13 + $0x78] sm:$0xff]   ;;  %v4702_v59 = vrot.slane %v7401_v53, 3 }
  0xe8   : > { %6674 = vmatmul.mubr.msk.bf16.gmra.mrb[28].mxu1 %vm335_vm1, %v1395_v16  ;;  %6840 = vmatmul.mubr.msk.bf16.gmra.mrb[4].mxu0 %vm335_vm1, %v4097_v25  ;;  %v1881_v16 = vrot.slane %v7381_v5, 1  ;;  %v4160_v42 = vsel %vm4053_vm6, %v4150_v24, %v4159_v29 }
  0xe9   : > { %6677 = vmatprep.mubr.msk.bf16.mxu1 %vm335_vm1, %v1397_v20  ;;  %6843 = vmatprep.mubr.msk.bf16.mxu0 %vm335_vm1, %v4106_v27  ;;  %v1883_v20 = vrot.slane %v7383_v11, 1  ;;  %v4165_v27 = vshll.u32 %v7384_v22, 16 }
  0xea   : > { %5277 = vperm.xlu1 %7260, %v5139_v13   ;;  %v1882_v25 = vsel %vm1362_vm5, %v1879_v60, %v1881_v16  ;;  %v5147_v60 = vld [vmem:[%s8834_s2 + $0x108] sm:$0xff] }
  0xeb   : > { %v1884_v30 = vsel %vm1362_vm5, %v1881_v16, %v1883_v20  ;;  %v4167_v7 = vrot.slane %v4165_v27, 3  ;;  %v1886_v50 = vsel %vm1362_vm5, %v1883_v20, %v1885_v57  ;;  %5312 = vperm.xlu0 %7259, %v5146_v40   ;;  %v1892_v16 = vsel %vm1362_vm5, %v1889_v0, %v1891_v6  ;;  %v7412_v0 = vld [vmem:[%s7632_s13 + $0x60] sm:$0xff]  }
  0xec   : > { %v1895_v27 = vrot.slane %v7395_v18, 1  ;;  %v1897_v57 = vrot.slane %v7397_v32, 1  ;;  %v7418_v32 = vld [vmem:[%s7632_s13 + $0x78] sm:$0xff]  }
  0xed   : > { %v4168_v49 = vor.u32 %v4167_v7, %v4164_v39 }
  0xee   : > { %v1896_v34 = vsel %vm1362_vm5, %v1893_v23, %v1895_v27 }
  0xef   : > { %v4169_v61 = vsel %vm4053_vm6, %v4159_v29, %v4168_v49  ;;  %v4178_v2 = vsel %vm4053_vm6, %v4168_v49, %v4177_v54  ;;  %5322 = vperm.xlu0 %7259, %v5148_v9   ;;  %v1894_v29 = vsel %vm1362_vm5, %v1891_v6, %v1893_v23  ;;  %v4700_v49 = vrot.slane %v7399_v43, 3  ;;  %v7407_v6 = vld [vmem:[%s7632_s13 + $0x38] sm:$0xff]  }
  0xf0   : > { %6678 = vmatmul.mubr.msk.bf16.gmra.mrb[32].mxu1 %vm335_vm1, %v1399_v41  ;;  %6844 = vmatmul.mubr.msk.bf16.gmra.mrb[8].mxu0 %vm335_vm1, %v4115_v52  ;;  %v7388_v41 = vld [vmem:[%s7632_s13 + $0x80] sm:$0xff]   ;;  %v2485_v9 = vshrl.u32 %v7412_v0, 16  ;;  %v4708_v15 = vrot.slane %v7407_v6, 3  ;;  %v2515_v43 = vshll.u32 %v7418_v32, 16 }
  0xf1   : > { %6683 = vmatprep.mubr.msk.bf16.mxu1 %vm335_vm1, %v1876_v46  ;;  %6847 = vmatprep.mubr.msk.bf16.mxu0 %vm335_vm1, %v4124_v58  ;;  %v7390_v46 = vld [vmem:[%s7632_s13 + $0x88] sm:$0xff]   ;;  %v4180_v51 = vshrl.u32 %v7388_v41, 16  ;;  %v4183_v52 = vshll.u32 %v7388_v41, 16 }
  0xf2   : > { %v4189_v56 = vshrl.u32 %v7390_v46, 16  ;;  %v4192_v58 = vshll.u32 %v7390_v46, 16  ;;  %v1898_v46 = vsel %vm1362_vm5, %v1895_v27, %v1897_v57 }
  0xf3   : > { %v4182_v62 = vrot.slane %v4180_v51, 2  ;;  %v4185_v63 = vrot.slane %v4183_v52, 3  ;;  %v7404_v51 = vld [vmem:[%s7632_s13 + $0x80] sm:$0xff]  }
  0xf4   : > { %v4191_v4 = vrot.slane %v4189_v56, 2  ;;  %v4194_v5 = vrot.slane %v4192_v58, 3  ;;  %v7403_v56 = vld [vmem:[%s7632_s13 + $0x28] sm:$0xff]   ;;  %v1903_v58 = vrot.slane %v7404_v51, 1  ;;  %v2517_v51 = vrot.slane %v2515_v43, 2 }
  0xf5   : > { %v4186_v11 = vor.u32 %v4185_v63, %v4182_v62  ;;  %v7408_v63 = vld [vmem:[%s7632_s13 + $0x90] sm:$0xff]   ;;  %v7430_v43 = vld [vmem:[%s7632_s13 + $0xa0] ss:$0 sps:$4 sm:$0x77]  }
  0xf6   : > { %v4195_v38 = vor.u32 %v4194_v5, %v4191_v4 }
  0xf7   : > { %v4187_v19 = vsel %vm4053_vm6, %v4177_v54, %v4186_v11  ;;  %v1901_v54 = vrot.slane %v7402_v47, 1 }
  0xf8   : > { %6684 = vmatmul.mubr.msk.bf16.vlgmr.msra.gmra.mrb[0].mxu1 %vm335_vm1, %v1878_v1  ;;  %6848 = vmatmul.mubr.msk.bf16.gmra.mrb[12].mxu0 %vm335_vm1, %v4133_v14  ;;  %v7392_v1 = vld [vmem:[%s7632_s13 + $0x90] sm:$0xff]   ;;  %v4196_v24 = vsel %vm4053_vm6, %v4186_v11, %v4195_v38 }
  0xf9   : > { %6687 = vmatprep.mubr.msk.bf16.mxu1 %vm335_vm1, %v1880_v8  ;;  %6910 = vmatpush3.bf16.msra.mxu1 %v7618_v3  ;;  %v5141_v3 = vld [vmem:[%s8834_s2 + $0xd8] sm:$0xff]  ;;  %v4198_v13 = vshrl.u32 %v7392_v1, 16  ;;  %v4201_v14 = vshll.u32 %v7392_v1, 16  ;;  %v1904_v62 = vsel %vm1362_vm5, %v1901_v54, %v1903_v58  ;;  %v4703_v1 = vsel %vm4698_vm7, %v4700_v49, %v4702_v59 }
  0xfa   : > { %6851 = vmatprep.mubr.msk.bf16.mxu0 %vm335_vm1, %v4142_v17  ;;  %5287 = vperm.xlu1 %7260, %v5141_v3   ;;  %v7394_v8 = vld [vmem:[%s7632_s13 + $0x98] sm:$0xff]   ;;  %v7396_v3 = vld [vmem:[%s7632_s13 + $0xa0] ss:$0 sps:$4 sm:$0x77]  }
  0xfb   : > { %v4207_v22 = vshrl.u32 %v7394_v8, 16  ;;  %v4210_v17 = vshll.u32 %v7394_v8, 16  ;;  %v4200_v20 = vrot.slane %v4198_v13, 2  ;;  %v4203_v21 = vrot.slane %v4201_v14, 3  ;;  %v7414_v14 = vld [vmem:[%s7632_s13 + $0x68] sm:$0xff]  }
  0xfc   : > { %v4219_v31 = vshll.u32 %v7396_v3, 16  ;;  %v1907_v8 = vrot.slane %v7408_v63, 1  ;;  %v7410_v13 = vld [vmem:[%s7632_s13 + $0x98] ss:$0 sps:$4 sm:$0x11]   ;;  %v2497_v23 = vshll.u32 %v7414_v14, 16 }
  0xfd   : > { %v4212_v26 = vrot.slane %v4210_v17, 3  ;;  %v4204_v28 = vor.u32 %v4203_v21, %v4200_v20  ;;  %v7416_v17 = vld [vmem:[%s7632_s13 + $0x70] sm:$0xff]   ;;  %v1909_v20 = vrot.slane %v7410_v13, 1  ;;  %v2494_v21 = vshrl.u32 %v7414_v14, 16 }
  0xfe   : > { %5297 = vperm.xlu1 %7260, %v5143_v35   ;;  %v7400_v35 = vld [vmem:[%s7632_s13 + $0x70] sm:$0xff]   ;;  %v4221_v7 = vrot.slane %v4219_v31, 3  ;;  %v2506_v27 = vshll.u32 %v7416_v17, 16  ;;  %v2499_v31 = vrot.slane %v2497_v23, 2 }
  0xff   : > { %v1899_v44 = vrot.slane %v7400_v35, 1 }
 0x100   : > { %6688 = vmatmul.mubr.msk.bf16.gmra.mrb[4].mxu1 %vm335_vm1, %v1882_v25  ;;  %6852 = vmatmul.mubr.msk.bf16.gmra.mrb[16].mxu0 %vm335_vm1, %v4151_v37  ;;  %v4209_v25 = vrot.slane %v4207_v22, 2  ;;  %v4205_v37 = vsel %vm4053_vm6, %v4195_v38, %v4204_v28 }
 0x101   : > { %6691 = vmatprep.mubr.msk.bf16.mxu1 %vm335_vm1, %v1884_v30  ;;  %6855 = vmatprep.mubr.msk.bf16.mxu0 %vm335_vm1, %v4160_v42  ;;  %v4216_v30 = vshrl.u32 %v7396_v3, 16  ;;  %v7398_v42 = vld [vmem:[%s7632_s13 + $0x10] sm:$0xf8]   ;;  %v1902_v40 = vsel %vm1362_vm5, %v1899_v44, %v1901_v54 }
 0x102   : > { %5307 = vperm.xlu1 %7260, %v5145_v48   ;;  %v4213_v33 = vor.u32 %v4212_v26, %v4209_v25  ;;  %v4699_v48 = vrot.slane %v7398_v42, 3  ;;  %v2503_v26 = vshrl.u32 %v7416_v17, 16  ;;  %v2512_v42 = vshrl.u32 %v7418_v32, 16 }
 0x103   : > { %v4218_v39 = vrot.slane %v4216_v30, 2  ;;  %v2496_v30 = vrot.slane %v2494_v21, 1 }
 0x104   : > { %v4214_v41 = vsel %vm4053_vm6, %v4204_v28, %v4213_v33  ;;  %v2505_v35 = vrot.slane %v2503_v26, 1 }
 0x105   : > { %v4222_v45 = vor.u32 %v4221_v7, %v4218_v39  ;;  %v7420_v39 = vld [vmem:[%s7632_s13 + $0x80] sm:$0xff]  }
 0x106   : > { %5317 = vperm.xlu1 %7260, %v5147_v60   ;;  %v7406_v60 = vld [vmem:[%s7632_s13 + $0x88] sm:$0xff]   ;;  %v2524_v47 = vshll.u32 %v7420_v39, 16 }
 0x107   : > { %v4223_v52 = vsel %vm4053_vm6, %v4213_v33, %v4222_v45  ;;  %v1905_v4 = vrot.slane %v7406_v60, 1  ;;  %v7415_v45 = vld [vmem:[%s7632_s13 + $0x58] sm:$0xff]  }
 0x108   : > { %6692 = vmatmul.mubr.msk.bf16.gmra.mrb[8].mxu1 %vm335_vm1, %v1886_v50  ;;  %6856 = vmatmul.mubr.msk.bf16.gmra.mrb[20].mxu0 %vm335_vm1, %v4169_v61  ;;  %v1900_v50 = vsel %vm1362_vm5, %v1897_v57, %v1899_v44  ;;  %v4704_v61 = vrot.slane %v7403_v56, 3  ;;  %v7413_v57 = vld [vmem:[%s7632_s13 + $0x50] sm:$0xff]   ;;  %v4716_v53 = vrot.slane %v7415_v45, 3  ;;  %v2526_v56 = vrot.slane %v2524_v47, 2 }
 0x109   : > { %6695 = vmatprep.mubr.msk.bf16.mxu1 %vm335_vm1, %v1888_v55  ;;  %6859 = vmatprep.mubr.msk.bf16.mxu0 %vm335_vm1, %v4178_v2  ;;  %v4701_v55 = vsel %vm4698_vm7, %v4699_v48, %v4700_v49  ;;  %v7405_v2 = vld [vmem:[%s7632_s13 + $0x30] sm:$0xff]   ;;  %v1908_v38 = vsel %vm1362_vm5, %v1905_v4, %v1907_v8  ;;  %v4714_v48 = vrot.slane %v7413_v57, 3  ;;  %v4734_v45 = vrot.slane %v7430_v43, 3 }
 0x10a   : > { %5327 = vperm.xlu1 %7260, %v5149_v10   ;;  %v4705_v5 = vsel %vm4698_vm7, %v4702_v59, %v4704_v61  ;;  %v2488_v10 = vshll.u32 %v7412_v0, 16  ;;  %v4706_v11 = vrot.slane %v7405_v2, 3  ;;  %v7419_v0 = vld [vmem:[%s7632_s13 + $0x68] sm:$0xff]  }
 0x10b   : > { %v4717_v63 = vsel %vm4698_vm7, %v4714_v48, %v4716_v53 }
 0x10c   : > { %v2490_v22 = vrot.slane %v2488_v10, 2  ;;  %v4707_v18 = vsel %vm4698_vm7, %v4704_v61, %v4706_v11  ;;  %v4709_v3 = vsel %vm4698_vm7, %v4706_v11, %v4708_v15  ;;  %v7426_v10 = vld [vmem:[%s7632_s13 + $0x98] ss:$0 sps:$4 sm:$0x33]   ;;  %v4720_v11 = vrot.slane %v7419_v0, 3 }
 0x10d   : > { %v2551_v17 = vshll.u32 %v7426_v10, 16 }
 0x110   : > { %6696 = vmatmul.mubr.msk.bf16.gmra.mrb[12].mxu1 %vm335_vm1, %v1890_v12  ;;  %6860 = vmatmul.mubr.msk.bf16.gmra.mrb[24].mxu0 %vm335_vm1, %v4187_v19  ;;  %v1906_v12 = vsel %vm1362_vm5, %v1903_v58, %v1905_v4  ;;  %v7409_v19 = vld [vmem:[%s7632_s13 + $0x40] sm:$0xff]   ;;  %v7424_v58 = vld [vmem:[%s7632_s13 + $0x90] sm:$0xff]  }
 0x111   : > { %6699 = vmatprep.mubr.msk.bf16.mxu1 %vm335_vm1, %v1892_v16  ;;  %6863 = vmatprep.mubr.msk.bf16.mxu0 %vm335_vm1, %v4196_v24  ;;  %v2487_v16 = vrot.slane %v2485_v9, 1  ;;  %v7411_v24 = vld [vmem:[%s7632_s13 + $0x48] sm:$0xff]   ;;  %v4710_v28 = vrot.slane %v7409_v19, 3  ;;  %v2539_v2 = vshrl.u32 %v7424_v58, 16  ;;  %v2542_v4 = vshll.u32 %v7424_v58, 16  ;;  %v7423_v19 = vld [vmem:[%s7632_s13 + $0x78] sm:$0xff]  }
 0x112   : > { %v4712_v33 = vrot.slane %v7411_v24, 3  ;;  %v2553_v24 = vrot.slane %v2551_v17, 2 }
 0x113   : > { %v2491_v25 = vor.u32 %v2490_v22, %v2487_v16  ;;  %v4711_v7 = vsel %vm4698_vm7, %v4708_v15, %v4710_v28  ;;  %v2541_v13 = vrot.slane %v2539_v2, 1  ;;  %v2544_v14 = vrot.slane %v2542_v4, 2 }
 0x114   : > { %v4713_v44 = vsel %vm4698_vm7, %v4710_v28, %v4712_v33  ;;  %v4715_v59 = vsel %vm4698_vm7, %v4712_v33, %v4714_v48  ;;  %v2548_v22 = vshrl.u32 %v7426_v10, 16  ;;  %v7425_v28 = vld [vmem:[%s7632_s13 + $0x80] sm:$0xff]  }
 0x115   : > { %v4726_v32 = vrot.slane %v7425_v28, 3 }
 0x118   : > { %6700 = vmatmul.mubr.msk.bf16.gmra.mrb[16].mxu1 %vm335_vm1, %v1894_v29  ;;  %6864 = vmatmul.mubr.msk.bf16.gmra.mrb[28].mxu0 %vm335_vm1, %v4205_v37  ;;  %v1910_v29 = vsel %vm1362_vm5, %v1907_v8, %v1909_v20  ;;  %v2508_v37 = vrot.slane %v2506_v27, 2  ;;  %v2545_v20 = vor.u32 %v2544_v14, %v2541_v13 }
 0x119   : > { %6703 = vmatprep.mubr.msk.bf16.mxu1 %vm335_vm1, %v1896_v34  ;;  %6867 = vmatprep.mubr.msk.bf16.mxu0 %vm335_vm1, %v4214_v41  ;;  %v2492_v34 = vsel %vm2385_vm2, %v7704_v36, %v2491_v25  ;;  %v2500_v41 = vor.u32 %v2499_v31, %v2496_v30  ;;  %v2521_v36 = vshrl.u32 %v7420_v39, 16  ;;  %v7427_v31 = vld [vmem:[%s7632_s13 + $0x88] sm:$0xff]  }
 0x11b   : > { %v2501_v49 = vsel %vm2385_vm2, %v2491_v25, %v2500_v41  ;;  %v4724_v25 = vrot.slane %v7423_v19, 3 }
 0x120   : > { %6704 = vmatmul.mubr.msk.bf16.gmra.mrb[20].mxu1 %vm335_vm1, %v1898_v46  ;;  %6868 = vmatmul.mubr.msk.bf16.gmra.mrb[32].mxu0 %vm335_vm1, %v4223_v52  ;;  %v2509_v46 = vor.u32 %v2508_v37, %v2505_v35  ;;  %v7422_v52 = vld [vmem:[%s7632_s13 + $0x88] sm:$0xff]   ;;  %v4727_v35 = vsel %vm4698_vm7, %v4724_v25, %v4726_v32  ;;  %v7428_v37 = vld [vmem:[%s7632_s13 + $0x90] sm:$0xff]  }
 0x121   : > { %6707 = vmatprep.mubr.msk.bf16.mxu1 %vm335_vm1, %v1900_v50  ;;  %6873 = vmatprep.mubr.msk.bf16.mxu0 %vm335_vm1, %v4701_v55  ;;  %v2514_v50 = vrot.slane %v2512_v42, 1  ;;  %v2523_v55 = vrot.slane %v2521_v36, 1  ;;  %v2530_v61 = vshrl.u32 %v7422_v52, 16  ;;  %v4730_v57 = vrot.slane %v7428_v37, 3 }
 0x122   : > { %v2510_v54 = vsel %vm2385_vm2, %v2500_v41, %v2509_v46 }
 0x123   : > { %v2518_v60 = vor.u32 %v2517_v51, %v2514_v50  ;;  %v2532_v8 = vrot.slane %v2530_v61, 1 }
 0x125   : > { %v2519_v6 = vsel %vm2385_vm2, %v2509_v46, %v2518_v60 }
 0x128   : > { %6708 = vmatmul.mubr.msk.bf16.gmra.mrb[24].mxu1 %vm335_vm1, %v1902_v40  ;;  %6874 = vmatmul.mubr.msk.bf16.vlgmr.msra.gmra.mrb[0].mxu0 %vm335_vm1, %v4703_v1  ;;  %v7417_v40 = vld [vmem:[%s7632_s13 + $0x60] sm:$0xff]   ;;  %v2527_v1 = vor.u32 %v2526_v56, %v2523_v55 }
 0x129   : > { %6711 = vmatprep.mubr.msk.bf16.mxu1 %vm335_vm1, %v1904_v62  ;;  %6877 = vmatprep.mubr.msk.bf16.mxu0 %vm335_vm1, %v4705_v5  ;;  %v2533_v62 = vshll.u32 %v7422_v52, 16  ;;  %v4718_v5 = vrot.slane %v7417_v40, 3  ;;  %v8290_v40 = vpop.permute.xlu1 %5162 }
 0x12b   : > { %v2535_v9 = vrot.slane %v2533_v62, 2  ;;  %v4719_v15 = vsel %vm4698_vm7, %v4716_v53, %v4718_v5 }
 0x12d   : > { %v2536_v16 = vor.u32 %v2535_v9, %v2532_v8 }
 0x12f   : > { %v2537_v23 = vsel %vm2385_vm2, %v2527_v1, %v2536_v16  ;;  %v2546_v26 = vsel %vm2385_vm2, %v2536_v16, %v2545_v20 }
 0x130   : > { %6712 = vmatmul.mubr.msk.bf16.gmra.mrb[28].mxu1 %vm335_vm1, %v1906_v12  ;;  %6878 = vmatmul.mubr.msk.bf16.gmra.mrb[4].mxu0 %vm335_vm1, %v4707_v18  ;;  %v2528_v12 = vsel %vm2385_vm2, %v2518_v60, %v2527_v1  ;;  %v4721_v18 = vsel %vm4698_vm7, %v4718_v5, %v4720_v11 }
 0x131   : > { %6715 = vmatprep.mubr.msk.bf16.mxu1 %vm335_vm1, %v1908_v38  ;;  %6881 = vmatprep.mubr.msk.bf16.mxu0 %vm335_vm1, %v4709_v3  ;;  %v7421_v38 = vld [vmem:[%s7632_s13 + $0x70] sm:$0xff]   ;;  %v2550_v3 = vrot.slane %v2548_v22, 1 }
 0x132   : > { %v4722_v21 = vrot.slane %v7421_v38, 3  ;;  %v8302_v1 = vpop.permute.xlu1 %5167 }
 0x134   : > { %v4723_v27 = vsel %vm4698_vm7, %v4720_v11, %v4722_v21  ;;  %v4725_v30 = vsel %vm4698_vm7, %v4722_v21, %v4724_v25 }
 0x136   : > { %v8312_v8 = vpop.permute.xlu1 %5177 }
 0x138   : > { %6716 = vmatmul.mubr.msk.bf16.gmra.mrb[32].mxu1 %vm335_vm1, %v1910_v29  ;;  %6882 = vmatmul.mubr.msk.bf16.gmra.mrb[8].mxu0 %vm335_vm1, %v4711_v7  ;;  %v2554_v29 = vor.u32 %v2553_v24, %v2550_v3  ;;  %v7429_v7 = vld [vmem:[%s7632_s13 + $0x98] sm:$0xff]   ;;  %s8325_s13 = sand.u32 1, %s7518_s16  }
 0x139   : > { %6741 = vmatprep.mubr.msk.bf16.mxu1 %vm335_vm1, %v2492_v34  ;;  %6885 = vmatprep.mubr.msk.bf16.mxu0 %vm335_vm1, %v4713_v44  ;;  %v4728_v34 = vrot.slane %v7427_v31, 3  ;;  %v4732_v41 = vrot.slane %v7429_v7, 3  ;;  %s7209_s27 = smul.u32 144, %s8325_s13  ;;  %s5741_s8 = scalar_lea.sflag [#allocation4], %s8325_s13 }
 0x13a   : > { %v2555_v33 = vsel %vm2385_vm2, %v2545_v20, %v2554_v29  ;;  %v8318_v11 = vpop.permute.xlu1 %5187 }
 0x13b   : > { %v4729_v39 = vsel %vm4698_vm7, %v4726_v32, %v4728_v34  ;;  %v4731_v42 = vsel %vm4698_vm7, %v4728_v34, %v4730_v57  ;;  %v4733_v44 = vsel %vm4698_vm7, %v4730_v57, %v4732_v41  ;;  %v4735_v46 = vsel %vm4698_vm7, %v4732_v41, %v4734_v45  ;;  %s8352_s28 = scalar_lea.vmem [#allocation3], %s7209_s27 }
 0x13c   : > { %s5759_s30 = sshll.u32 %s8352_s28, 4  ;;  %s8622_s30 = int_to_ptr.vmem [resolvable:$true] %s5759_s30 }
 0x13d   : > { %s7432_s9 = scalar_lea.vmem %s8622_s30, 2304  ;;  %p7439_p0 = scmp.lt.s32.totalorder %s8622_s30, %s7437_s11 }
 0x13e   : > { %v8322_v13 = vpop.permute.xlu1 %5197  ;;  %p7433_p11 = scmp.ne.s32.totalorder %s8622_s30, %s7432_s9  ;;  %p7440_p1 = scmp.lt.s32.totalorder %s7438_s12, %s7432_s9 }
 0x140   : > { %6742 = vmatmul.mubr.msk.bf16.vlgmr.msra.gmra.mrb[20].mxu1 %vm335_vm1, %v2501_v49  ;;  %6886 = vmatmul.mubr.msk.bf16.gmra.mrb[12].mxu0 %vm335_vm1, %v4715_v59  ;;  %v8288_v59 = vpop.permute.xlu0 %5152  ;;  %p7434_p12 = pnand %p7433_p11, %p7596_p5  ;;  %p7441_p2 = por %p7440_p1, %p7439_p0 }
 0x141   : > { %6745 = vmatprep.mubr.msk.bf16.mxu1 %vm335_vm1, %v2510_v54  ;;  %6889 = vmatprep.mubr.msk.bf16.mxu0 %vm335_vm1, %v4717_v63 }
 0x142   : > { %v8330_v38 = vpop.permute.xlu1 %5207  ;;  %p7435_p13 = pneg %p7434_p12 }
 0x144   : > { %v8298_v63 = vpop.permute.xlu0 %5157  ;;  %p7442_p3 = pnand %p7441_p2, %p7435_p13 }
 0x148   : > { %6746 = vmatmul.mubr.msk.bf16.gmra.mrb[24].mxu1 %vm335_vm1, %v2519_v6  ;;  %6890 = vmatmul.mubr.msk.bf16.gmra.mrb[16].mxu0 %vm335_vm1, %v4719_v15  ;;  %v8306_v4 = vpop.permute.xlu0 %5172 }
 0x149   : > { %6749 = vmatprep.mubr.msk.bf16.mxu1 %vm335_vm1, %v2528_v12  ;;  %6893 = vmatprep.mubr.msk.bf16.mxu0 %vm335_vm1, %v4721_v18 }
 0x14c   : > { %v8316_v10 = vpop.permute.xlu0 %5182 }
 0x150   : > { %6750 = vmatmul.mubr.msk.bf16.gmra.mrb[28].mxu1 %vm335_vm1, %v2537_v23  ;;  %6894 = vmatmul.mubr.msk.bf16.gmra.mrb[20].mxu0 %vm335_vm1, %v4723_v27  ;;  %v8320_v12 = vpop.permute.xlu0 %5192 }
 0x151   : > { %6753 = vmatprep.mubr.msk.bf16.mxu1 %vm335_vm1, %v2546_v26  ;;  %6897 = vmatprep.mubr.msk.bf16.mxu0 %vm335_vm1, %v4725_v30  ;;  %v8350_v27 = vpop.permute.xlu1 %5217 }
 0x154   : > { %v8327_v14 = vpop.permute.xlu0 %5202 }
 0x158   : > { %6754 = vmatmul.mubr.msk.bf16.gmra.mrb[32].mxu1 %vm335_vm1, %v2555_v33  ;;  %6898 = vmatmul.mubr.msk.bf16.gmra.mrb[24].mxu0 %vm335_vm1, %v4727_v35  ;;  %v8340_v23 = vpop.permute.xlu0 %5212 }
 0x159   : > { %6901 = vmatprep.mubr.msk.bf16.mxu0 %vm335_vm1, %v4729_v39 }
 0x15c   : > { %v8364_v39 = vpop.permute.xlu0 %5222 }
 0x15d   : > { %8861 = vst [vmem:[#allocation9_spill] sm:$0xff] %v8364_v39 }
 0x160   : > { %6902 = vmatmul.mubr.msk.bf16.gmra.mrb[28].mxu0 %vm335_vm1, %v4731_v42 }
 0x161   : > { %6905 = vmatprep.mubr.msk.bf16.mxu0 %vm335_vm1, %v4733_v44  ;;  %v8372_v44 = vpop.permute.xlu1 %5227 }
 0x162   : > { %8862 = vst [vmem:[#allocation10_spill] sm:$0xff] %v8372_v44 }
 0x168   : > { %6906 = vmatmul.mubr.msk.bf16.gmra.mrb[32].mxu0 %vm335_vm1, %v4735_v46 }
 0x1cb   : > { %v6685_v36 = vpop.f32.mrb[0].mxu1 }
 0x1cc   : > { %v2002_v47 = vpop.f32.mrb[1].mxu1 }
 0x1cd   : > { %v6686_v48 = vpop.f32.mrb[2].mxu1 }
 0x1ce   : > { %v2005_v49 = vpop.f32.mrb[3].mxu1 }
 0x1d3   : > { %v6689_v50 = vpop.f32.mrb[4].mxu1 }
 0x1d4   : > { %v2018_v51 = vpop.f32.mrb[5].mxu1 }
 0x1d5   : > { %v6690_v52 = vpop.f32.mrb[6].mxu1 }
 0x1d6   : > { %v2021_v53 = vpop.f32.mrb[7].mxu1 }
 0x1db   : > { %v8280_v54 = vpop.f32.mrb[8].mxu1 }
 0x1dc   : > { %v8282_v55 = vpop.f32.mrb[9].mxu1 }
 0x1dd   : > { %v8284_v56 = vpop.f32.mrb[10].mxu1 }
 0x1de   : > { %v8286_v58 = vpop.f32.mrb[11].mxu1 }
 0x1e3   : > { %v8292_v60 = vpop.f32.mrb[12].mxu1 }
 0x1e4   : > { %v8294_v61 = vpop.f32.mrb[13].mxu1 }
 0x1e5   : > { %v8296_v62 = vpop.f32.mrb[14].mxu1 }
 0x1e6   : > { %v8300_v0 = vpop.f32.mrb[15].mxu1 }
 0x1eb   : > { %v8304_v2 = vpop.f32.mrb[16].mxu1 }
 0x1ec   : > { %v8308_v5 = vpop.f32.mrb[17].mxu1 }
 0x1ed   : > { %v8310_v6 = vpop.f32.mrb[18].mxu1 }
 0x1ee   : > { %v8314_v9 = vpop.f32.mrb[19].mxu1 }
 0x1fb   : > { %v6875_v15 = vpop.f32.mrb[0].mxu0 }
 0x1fc   : > { %v8332_v16 = vadd.f32 %v6875_v15, %v6685_v36  ;;  %v4827_v22 = vpop.f32.mrb[1].mxu0 }
 0x1fd   : > { %v8334_v17 = vadd.f32 %v4827_v22, %v2002_v47  ;;  %v6876_v18 = vpop.f32.mrb[2].mxu0 }
 0x1fe   : > { %v8336_v19 = vadd.f32 %v6876_v18, %v6686_v48  ;;  %v4830_v20 = vpop.f32.mrb[3].mxu0  ;;  %v5332_v28 = vmul.f32 %v8332_v16, %v8290_v40 }
 0x1ff   : > { %v8338_v21 = vadd.f32 %v4830_v20, %v2005_v49  ;;  %v5330_v24 = vmul.f32 %v8334_v17, %v8288_v59 }
 0x200   : > { %v6297_v3 = vpack.c.bf16 %v8336_v19, %v8332_v16  ;;  %v5333_v33 = vmul.f32 %v8336_v19, %v8302_v1 }
 0x201   : > { %v5331_v25 = vmul.f32 %v8338_v21, %v8298_v63  ;;  %v6292_v26 = vpack.c.bf16 %v8338_v21, %v8334_v17 }
 0x202   : > { %6379 = vst [vmem:[%s8352_s28 + $0x8] sm:$0xff] %v6297_v3   ;;  %v8394_v3 = vpop.permute.xlu1 %5237 }
 0x203   : > { %v5366_v29 = vadd.f32 %v5331_v25, %v5330_v24  ;;  %6293 = vst [vmem:[%s8352_s28] sm:$0xff] %v6292_v26   ;;  %v6879_v30 = vpop.f32.mrb[4].mxu0  ;;  %8864 = vst [vmem:[#allocation12_spill] sm:$0xff] %v8394_v3 }
 0x204   : > { %v8358_v31 = vadd.f32 %v6879_v30, %v6689_v50  ;;  %v4843_v32 = vpop.f32.mrb[5].mxu0 }
 0x205   : > { %v5367_v34 = vadd.f32 %v5366_v29, %v5332_v28  ;;  %v8362_v35 = vadd.f32 %v4843_v32, %v2018_v51  ;;  %v6880_v37 = vpop.f32.mrb[6].mxu0  ;;  %v8384_v51 = vpop.permute.xlu0 %5232 }
 0x206   : > { %v8366_v7 = vadd.f32 %v6880_v37, %v6690_v52  ;;  %v4846_v57 = vpop.f32.mrb[7].mxu0  ;;  %v5336_v48 = vmul.f32 %v8358_v31, %v8316_v10  ;;  %8863 = vst [vmem:[#allocation11_spill] sm:$0xff] %v8384_v51 }
 0x207   : > { %v5334_v41 = vmul.f32 %v8362_v35, %v8306_v4  ;;  %v5368_v42 = vadd.f32 %v5367_v34, %v5333_v33  ;;  %v8370_v43 = vadd.f32 %v4846_v57, %v2021_v53 }
 0x208   : > { %v6307_v45 = vpack.c.bf16 %v8366_v7, %v8358_v31  ;;  %v5337_v15 = vmul.f32 %v8366_v7, %v8318_v11 }
 0x209   : > { %v5369_v46 = vadd.f32 %v5368_v42, %v5334_v41  ;;  %v5335_v36 = vmul.f32 %v8370_v43, %v8312_v8  ;;  %v6302_v47 = vpack.c.bf16 %v8370_v43, %v8362_v35  ;;  %v8416_v37 = vpop.permute.xlu0 %5242 }
 0x20a   : > { %6381 = vst [vmem:[%s8352_s28 + $0x18] sm:$0xff] %v6307_v45   ;;  %8865 = vst [vmem:[#allocation13_spill] sm:$0xff] %v8416_v37  ;;  %v8424_v45 = vpop.permute.xlu1 %5247 }
 0x20b   : > { %v5370_v49 = vadd.f32 %v5369_v46, %v5335_v36  ;;  %6380 = vst [vmem:[%s8352_s28 + $0x10] sm:$0xff] %v6302_v47   ;;  %v6883_v50 = vpop.f32.mrb[8].mxu0  ;;  %8866 = vst [vmem:[#allocation14_spill] sm:$0xff] %v8424_v45 }
 0x20c   : > { %v8387_v52 = vadd.f32 %v6883_v50, %v8280_v54  ;;  %v4859_v53 = vpop.f32.mrb[9].mxu0 }
 0x20d   : > { %v5371_v22 = vadd.f32 %v5370_v49, %v5336_v48  ;;  %v8392_v18 = vadd.f32 %v4859_v53, %v8282_v55  ;;  %v6884_v20 = vpop.f32.mrb[10].mxu0 }
 0x20e   : > { %v8397_v24 = vadd.f32 %v6884_v20, %v8284_v56  ;;  %v4862_v25 = vpop.f32.mrb[11].mxu0  ;;  %v5340_v57 = vmul.f32 %v8387_v52, %v8327_v14 }
 0x20f   : > { %v5338_v54 = vmul.f32 %v8392_v18, %v8320_v12  ;;  %v5372_v26 = vadd.f32 %v5371_v22, %v5337_v15  ;;  %v8402_v28 = vadd.f32 %v4862_v25, %v8286_v58 }
 0x210   : > { %v6317_v55 = vpack.c.bf16 %v8397_v24, %v8387_v52  ;;  %v5341_v47 = vmul.f32 %v8397_v24, %v8330_v38 }
 0x211   : > { %v5373_v32 = vadd.f32 %v5372_v26, %v5338_v54  ;;  %v5339_v56 = vmul.f32 %v8402_v28, %v8322_v13  ;;  %v6312_v33 = vpack.c.bf16 %v8402_v28, %v8392_v18  ;;  %v8444_v54 = vpop.permute.xlu0 %5252 }
 0x212   : > { %6383 = vst [vmem:[%s8352_s28 + $0x28] sm:$0xff] %v6317_v55   ;;  %8867 = vst [vmem:[#allocation15_spill] sm:$0xff] %v8444_v54 }
 0x213   : > { %v8404_v29 = vpop.f32.mrb[20].mxu1  ;;  %v5374_v41 = vadd.f32 %v5373_v32, %v5339_v56  ;;  %6382 = vst [vmem:[%s8352_s28 + $0x20] sm:$0xff] %v6312_v33   ;;  %v6887_v42 = vpop.f32.mrb[12].mxu0 }
 0x214   : > { %v8408_v30 = vpop.f32.mrb[21].mxu1  ;;  %v8427_v46 = vadd.f32 %v6887_v42, %v8292_v60  ;;  %v4875_v36 = vpop.f32.mrb[13].mxu0 }
 0x215   : > { %v8414_v34 = vpop.f32.mrb[22].mxu1  ;;  %v5375_v48 = vadd.f32 %v5374_v41, %v5340_v57  ;;  %v8432_v49 = vadd.f32 %v4875_v36, %v8294_v61  ;;  %v6888_v50 = vpop.f32.mrb[14].mxu0 }
 0x216   : > { %v8419_v58 = vpop.f32.mrb[23].mxu1  ;;  %v8435_v53 = vadd.f32 %v6888_v50, %v8296_v62  ;;  %v4878_v15 = vpop.f32.mrb[15].mxu0  ;;  %v5344_v57 = vmul.f32 %v8427_v46, %v8364_v39 }
 0x217   : > { %v5342_v22 = vmul.f32 %v8432_v49, %v8340_v23  ;;  %v5376_v60 = vadd.f32 %v5375_v48, %v5341_v47  ;;  %v8440_v20 = vadd.f32 %v4878_v15, %v8300_v0  ;;  %v8456_v0 = vpop.permute.xlu1 %5257 }
 0x218   : > { %v6327_v61 = vpack.c.bf16 %v8435_v53, %v8427_v46  ;;  %8868 = vst [vmem:[#allocation16_spill] sm:$0xff] %v8456_v0  ;;  %v5345_v48 = vmul.f32 %v8435_v53, %v8372_v44 }
 0x219   : > { %v5377_v62 = vadd.f32 %v5376_v60, %v5342_v22  ;;  %v5343_v55 = vmul.f32 %v8440_v20, %v8350_v27  ;;  %v6322_v32 = vpack.c.bf16 %v8440_v20, %v8432_v49  ;;  %v8472_v60 = vpop.permute.xlu0 %5262 }
 0x21a   : > { %6385 = vst [vmem:[%s8352_s28 + $0x38] sm:$0xff] %v6327_v61   ;;  %8870 = vst [vmem:[#allocation18_spill] sm:$0xff] %v8472_v60 }
 0x21b   : > { %v8442_v25 = vpop.f32.mrb[24].mxu1  ;;  %v5378_v41 = vadd.f32 %v5377_v62, %v5343_v55  ;;  %6384 = vst [vmem:[%s8352_s28 + $0x30] sm:$0xff] %v6322_v32   ;;  %v6891_v42 = vpop.f32.mrb[16].mxu0 }
 0x21c   : > { %v8448_v26 = vpop.f32.mrb[25].mxu1  ;;  %v8465_v36 = vadd.f32 %v6891_v42, %v8304_v2  ;;  %v4891_v47 = vpop.f32.mrb[17].mxu0 }
 0x21d   : > { %v8454_v56 = vpop.f32.mrb[26].mxu1  ;;  %v5379_v50 = vadd.f32 %v5378_v41, %v5344_v57  ;;  %v8470_v15 = vadd.f32 %v4891_v47, %v8308_v5  ;;  %v6892_v22 = vpop.f32.mrb[18].mxu0 }
 0x21e   : > { %v8459_v33 = vpop.f32.mrb[27].mxu1  ;;  %v8475_v61 = vadd.f32 %v6892_v22, %v8310_v6  ;;  %v4894_v62 = vpop.f32.mrb[19].mxu0 }
 0x21f   : > { %8869 = vst [vmem:[#allocation17_spill] sm:$0xff] %v8470_v15  ;;  %v5346_v2 = vmul.f32 %v8470_v15, %v8384_v51  ;;  %v5380_v55 = vadd.f32 %v5379_v50, %v5345_v48  ;;  %v8480_v32 = vadd.f32 %v4894_v62, %v8314_v9  ;;  %v8484_v5 = vpop.permute.xlu1 %5267  ;;  %v5348_v50 = vmul.f32 %v8465_v36, %v8416_v37  ;;  %v8502_v44 = vpop.permute.xlu0 %5272 }
 0x220   : > { %v6337_v41 = vpack.c.bf16 %v8475_v61, %v8465_v36  ;;  %8872 = vst [vmem:[#allocation20_spill] sm:$0xff] %v8502_v44 }
 0x221   : > { %8871 = vst [vmem:[#allocation19_spill] sm:$0xff] %v8480_v32  ;;  %v5381_v6 = vadd.f32 %v5380_v55, %v5346_v2  ;;  %v5347_v47 = vmul.f32 %v8480_v32, %v8394_v3  ;;  %v6332_v22 = vpack.c.bf16 %v8480_v32, %v8470_v15  ;;  %v5349_v3 = vmul.f32 %v8475_v61, %v8424_v45 }
 0x222   : > { %6387 = vst [vmem:[%s8352_s28 + $0x48] sm:$0xff] %v6337_v41  }
 0x223   : > { %v8482_v57 = vpop.f32.mrb[28].mxu1  ;;  %v5382_v62 = vadd.f32 %v5381_v6, %v5347_v47  ;;  %6386 = vst [vmem:[%s8352_s28 + $0x40] sm:$0xff] %v6332_v22   ;;  %v6895_v51 = vpop.f32.mrb[20].mxu0 }
 0x224   : > { %v8488_v42 = vpop.f32.mrb[29].mxu1  ;;  %v8505_v2 = vadd.f32 %v6895_v51, %v8404_v29  ;;  %v4907_v55 = vpop.f32.mrb[21].mxu0 }
 0x225   : > { %v8494_v48 = vpop.f32.mrb[30].mxu1  ;;  %v5383_v32 = vadd.f32 %v5382_v62, %v5348_v50  ;;  %v8510_v41 = vadd.f32 %v4907_v55, %v8408_v30  ;;  %v6896_v39 = vpop.f32.mrb[22].mxu0 }
 0x226   : > { %v8497_v9 = vpop.f32.mrb[31].mxu1  ;;  %v8512_v15 = vpop.permute.xlu1 %5277  ;;  %v8515_v6 = vadd.f32 %v6896_v39, %v8414_v34 }
 0x227   : > { %8873 = vst [vmem:[#allocation21_spill] sm:$0xff] %v8510_v41  ;;  %8874 = vst [vmem:[#allocation22_spill] sm:$0xff] %v8512_v15  ;;  %v4910_v47 = vpop.f32.mrb[23].mxu0  ;;  %v5350_v51 = vmul.f32 %v8510_v41, %v8444_v54  ;;  %v5384_v29 = vadd.f32 %v5383_v32, %v5349_v3  ;;  %v8530_v37 = vpop.permute.xlu0 %5282 }
 0x228   : > { %v8520_v22 = vadd.f32 %v4910_v47, %v8419_v58  ;;  %v6347_v30 = vpack.c.bf16 %v8515_v6, %v8505_v2  ;;  %v5352_v58 = vmul.f32 %v8505_v2, %v8472_v60  ;;  %v5353_v54 = vmul.f32 %v8515_v6, %v8484_v5 }
 0x229   : > { %v5385_v55 = vadd.f32 %v5384_v29, %v5350_v51 }
 0x22a   : > { %8875 = vst [vmem:[#allocation23_spill] sm:$0xff] %v8520_v22  ;;  %v5351_v45 = vmul.f32 %v8520_v22, %v8456_v0  ;;  %v6342_v39 = vpack.c.bf16 %v8520_v22, %v8510_v41  ;;  %6389 = vst [vmem:[%s8352_s28 + $0x58] sm:$0xff] %v6347_v30   ;;  %v8538_v51 = vpop.permute.xlu1 %5287 }
 0x22b   : > { %v6755_v50 = vpop.f32.mrb[32].mxu1  ;;  %v6899_v47 = vpop.f32.mrb[24].mxu0  ;;  %8876 = vst [vmem:[#allocation24_spill] sm:$0xff] %v8538_v51 }
 0x22c   : > { %v2775_v62 = vpop.f32.mrb[33].mxu1  ;;  %v5386_v32 = vadd.f32 %v5385_v55, %v5351_v45  ;;  %6388 = vst [vmem:[%s8352_s28 + $0x50] sm:$0xff] %v6342_v39   ;;  %v8541_v29 = vadd.f32 %v6899_v47, %v8442_v25  ;;  %v4923_v0 = vpop.f32.mrb[25].mxu0 }
 0x22d   : > { %v8528_v34 = vpop.f32.mrb[34].mxu1  ;;  %v8546_v30 = vadd.f32 %v4923_v0, %v8448_v26  ;;  %v6900_v41 = vpop.f32.mrb[26].mxu0 }
 0x22e   : > { %v8533_v3 = vpop.f32.mrb[35].mxu1  ;;  %v5387_v22 = vadd.f32 %v5386_v32, %v5352_v58  ;;  %v8549_v45 = vadd.f32 %v6900_v41, %v8454_v56  ;;  %v4926_v55 = vpop.f32.mrb[27].mxu0 }
 0x22f   : > { %v5354_v39 = vmul.f32 %v8546_v30, %v8502_v44  ;;  %v8554_v47 = vadd.f32 %v4926_v55, %v8459_v33  ;;  %v8556_v60 = vpop.permute.xlu0 %5292  ;;  %v8564_v41 = vpop.permute.xlu1 %5297 }
 0x230   : > { %v5388_v25 = vadd.f32 %v5387_v22, %v5353_v54  ;;  %8877 = vst [vmem:[#allocation25_spill] sm:$0xff] %v8556_v60  ;;  %v6357_v58 = vpack.c.bf16 %v8549_v45, %v8541_v29  ;;  %8878 = vst [vmem:[#allocation26_spill] sm:$0xff] %v8564_v41  ;;  %v5356_v54 = vmul.f32 %v8541_v29, %v8530_v37 }
 0x231   : > { %v5355_v0 = vmul.f32 %v8554_v47, %v8512_v15  ;;  %v6352_v56 = vpack.c.bf16 %v8554_v47, %v8546_v30 }
 0x232   : > { %v5389_v26 = vadd.f32 %v5388_v25, %v5354_v39  ;;  %6391 = vst [vmem:[%s8352_s28 + $0x68] sm:$0xff] %v6357_v58   ;;  %v5357_v39 = vmul.f32 %v8549_v45, %v8538_v51 }
 0x233   : > { %6390 = vst [vmem:[%s8352_s28 + $0x60] sm:$0xff] %v6352_v56   ;;  %v6903_v22 = vpop.f32.mrb[28].mxu0  ;;  %v8578_v44 = vpop.permute.xlu0 %5302 }
 0x234   : > { %v5390_v33 = vadd.f32 %v5389_v26, %v5355_v0  ;;  %v8571_v32 = vadd.f32 %v6903_v22, %v8482_v57  ;;  %v4939_v55 = vpop.f32.mrb[29].mxu0  ;;  %8879 = vst [vmem:[#allocation27_spill] sm:$0xff] %v8578_v44  ;;  %v8588_v51 = vpop.permute.xlu1 %5307 }
 0x235   : > { %v8576_v15 = vadd.f32 %v4939_v55, %v8488_v42  ;;  %v6904_v58 = vpop.f32.mrb[30].mxu0  ;;  %8880 = vst [vmem:[#allocation28_spill] sm:$0xff] %v8588_v51 }
 0x236   : > { %v5391_v25 = vadd.f32 %v5390_v33, %v5356_v54  ;;  %v8581_v26 = vadd.f32 %v6904_v58, %v8494_v48  ;;  %v4942_v0 = vpop.f32.mrb[31].mxu0  ;;  %v5360_v55 = vmul.f32 %v8571_v32, %v8578_v44 }
 0x237   : > { %v5358_v57 = vmul.f32 %v8576_v15, %v8556_v60  ;;  %v8586_v22 = vadd.f32 %v4942_v0, %v8497_v9 }
 0x238   : > { %v5392_v56 = vadd.f32 %v5391_v25, %v5357_v39  ;;  %v6367_v42 = vpack.c.bf16 %v8581_v26, %v8571_v32  ;;  %v8600_v25 = vpop.permute.xlu0 %5312 }
 0x239   : > { %v5359_v48 = vmul.f32 %v8586_v22, %v8564_v41  ;;  %v6362_v33 = vpack.c.bf16 %v8586_v22, %v8576_v15  ;;  %8881 = vst [vmem:[#allocation29_spill] sm:$0xff] %v8600_v25 }
 0x23a   : > { %v5393_v54 = vadd.f32 %v5392_v56, %v5358_v57  ;;  %6393 = vst [vmem:[%s8352_s28 + $0x78] sm:$0xff] %v6367_v42   ;;  %v5361_v57 = vmul.f32 %v8581_v26, %v8588_v51  ;;  %v8610_v42 = vpop.permute.xlu1 %5317 }
 0x23b   : > { %6392 = vst [vmem:[%s8352_s28 + $0x70] sm:$0xff] %v6362_v33   ;;  %v6907_v39 = vpop.f32.mrb[32].mxu0  ;;  %8882 = vst [vmem:[#allocation30_spill] sm:$0xff] %v8610_v42 }
 0x23c   : > { %v5394_v9 = vadd.f32 %v5393_v54, %v5359_v48  ;;  %v8602_v58 = vadd.f32 %v6907_v39, %v6755_v50  ;;  %v4955_v0 = vpop.f32.mrb[33].mxu0 }
 0x23d   : > { %v8606_v41 = vadd.f32 %v4955_v0, %v2775_v62  ;;  %v6908_v60 = vpop.f32.mrb[34].mxu0 }
 0x23e   : > { %v5395_v56 = vadd.f32 %v5394_v9, %v5360_v55  ;;  %v8613_v54 = vadd.f32 %v6908_v60, %v8528_v34  ;;  %v4958_v48 = vpop.f32.mrb[35].mxu0 }
 0x23f   : > { %v5362_v50 = vmul.f32 %v8606_v41, %v8600_v25  ;;  %v8618_v55 = vadd.f32 %v4958_v48, %v8533_v3  ;;  %v5323_v3 = vpop.permute.xlu0 %5322 }
 0x240   : > { %v5396_v33 = vadd.f32 %v5395_v56, %v5361_v57  ;;  %v6377_v62 = vpack.c.bf16 %v8613_v54, %v8602_v58  ;;  %v5364_v39 = vmul.f32 %v8602_v58, %v5323_v3  ;;  %v5328_v57 = vpop.permute.xlu1 %5327 }
 0x241   : > { %v5363_v60 = vmul.f32 %v8618_v55, %v8610_v42  ;;  %v6372_v34 = vpack.c.bf16 %v8618_v55, %v8606_v41 }
 0x242   : > { %v5397_v9 = vadd.f32 %v5396_v33, %v5362_v50  ;;  %6395 = vst [vmem:[%s8352_s28 + $0x88] sm:$0xff] %v6377_v62  }
 0x243   : > { %6394 = vst [vmem:[%s8352_s28 + $0x80] sm:$0xff] %v6372_v34  }
 0x244   : > { %v5398_v0 = vadd.f32 %v5397_v9, %v5363_v60 }
 0x245   : > { %7445 = shalt.err (!%p7442_p3)
}
 0x246   : > { %s7446_s14 = scalar_lea.hbm %s8631_s7, 2304  ;;  %s7450_s23 = scalar_lea.hbm %s8835_s3, 4608 }
 0x247   : > { %p7447_p4 = scmp.ne.s32.totalorder %s8631_s7, %s7446_s14  ;;  %p7451_p9 = scmp.lt.u32.totalorder %s8631_s7, %s8835_s3 }
 0x248   : > { %p7452_p10 = scmp.lt.u32.totalorder %s7450_s23, %s7446_s14  ;;  %p7454_p12 = scmp.lt.u32.totalorder %s7446_s14, %s8631_s7 }
 0x249   : > { %p7448_p7 = pnand %p7447_p4, %p7596_p5 }
 0x24a   : > { %p7453_p11 = por %p7452_p10, %p7451_p9 }
 0x24b   : > { %p7449_p8 = pneg %p7448_p7 }
 0x24c   : > { %p7455_p13 = por %p7454_p12, %p7453_p11 }
 0x24e   : > { %p7456_p0 = pnand %p7455_p13, %p7449_p8 }
 0x250   : > { %7459 = shalt.err (!%p7456_p0)
}
 0x251   : > { %s7530_s29 = smov 64   ;;  %s7531_s5 = smov 4   ;;  %v5365_v56 = vmul.f32 %v8613_v54, %v5328_v57  ;;  %v5399_v48 = vadd.f32 %v5398_v0, %v5364_v39  ;;  %vm5737_vm8 = vcmask 1040384  }
 0x252   : > { %7212 = dma.vmem_to_hbm [thread:$0]  (%p7596_p5), %s8622_s30, 2304, %s8631_s7, %s5741_s8, %s7530_s29, %s7530_s29, %s7531_s5  }
 0x253   : > { %v5400_v50 = vadd.f32 %v5399_v48, %v5365_v56  ;;  %s5870_s30 = sshll.u32 %s8325_s13, 1  ;;  %s6250_s6 = sshll.u32 %s7579_s19, 5 }
 0x254   : > { %s201_s7 = scalar_lea.vmem [#allocation5], %s5870_s30  ;;  %s8788_s11 = scalar_lea.hbm %s8836_s4, %s6250_s6 }
 0x255   : > { %v5401_v33 = vrot.slane %v5400_v50, 4  ;;  %s5775_s8 = sshll.u32 %s201_s7, 4  ;;  %s5746_s12 = scalar_lea.sflag [#allocation6], %s8325_s13  ;;  %s8790_s8 = int_to_ptr.vmem [resolvable:$true] %s5775_s8 }
 0x256   : > { %s7460_s14 = scalar_lea.vmem %s8790_s8, 32  ;;  %s7532_s19 = smov [#allocation5]  }
 0x257   : > { %v5402_v62 = vadd.f32 %v5401_v33, %v5400_v50  ;;  %p7461_p1 = scmp.ne.s32.totalorder %s8790_s8, %s7460_s14  ;;  %s7464_s20 = sshll.u32 %s7532_s19, 4  ;;  %s7465_s20 = int_to_ptr.vmem [resolvable:$false] %s7464_s20 }
 0x258   : > { %s7466_s22 = scalar_lea.vmem %s7465_s20, 64  ;;  %p7467_p4 = scmp.lt.s32.totalorder %s8790_s8, %s7465_s20 }
 0x259   : > { %v5403_v9 = vrot.slane %v5402_v62, 2  ;;  %p7462_p2 = pnand %p7461_p1, %p7596_p5  ;;  %p7468_p7 = scmp.lt.s32.totalorder %s7466_s22, %s7460_s14 }
 0x25b   : > { %v5404_v60 = vadd.f32 %v5403_v9, %v5402_v62  ;;  %p7463_p3 = pneg %p7462_p2  ;;  %p7469_p8 = por %p7468_p7, %p7467_p4 }
 0x25d   : > { %v5405_v34 = vrot.slane %v5404_v60, 1  ;;  %p7470_p9 = pnand %p7469_p8, %p7463_p3 }
 0x25f   : > { %v8661_v42 = vadd.f32 %v5405_v34, %v5404_v60 }
 0x261   : > { %v8664_v25 = vmul.f32 0.00390625, %v8661_v42 }
 0x263   : > { %v5441_v51 = vsub.f32 %v8618_v55, %v8664_v25  ;;  %v5442_v44 = vsub.f32 %v8602_v58, %v8664_v25  ;;  %v5443_v39 = vsub.f32 %v8613_v54, %v8664_v25  ;;  %v5408_v0 = vsub.f32 %v8334_v17, %v8664_v25 }
 0x264   : > { %v5409_v56 = vsub.f32 %v8338_v21, %v8664_v25  ;;  %v5410_v33 = vsub.f32 %v8332_v16, %v8664_v25  ;;  %v5411_v54 = vsub.f32 %v8336_v19, %v8664_v25  ;;  %v5412_v17 = vsub.f32 %v8362_v35, %v8664_v25 }
 0x265   : > { %v8676_v48 = vmul.f32 %v5442_v44, %v5323_v3  ;;  %v8678_v50 = vmul.f32 %v5443_v39, %v5328_v57  ;;  %v5444_v62 = vmul.f32 %v5408_v0, %v8288_v59  ;;  %v5413_v3 = vsub.f32 %v8370_v43, %v8664_v25 }
 0x266   : > { %v5445_v58 = vmul.f32 %v5409_v56, %v8298_v63  ;;  %v5446_v9 = vmul.f32 %v5410_v33, %v8290_v40  ;;  %v5447_v57 = vmul.f32 %v5411_v54, %v8302_v1  ;;  %v5414_v59 = vsub.f32 %v8358_v31, %v8664_v25 }
 0x267   : > { %v5480_v21 = vmul.f32 %v5444_v62, %v5444_v62  ;;  %v5448_v63 = vmul.f32 %v5412_v17, %v8306_v4  ;;  %v5415_v19 = vsub.f32 %v8366_v7, %v8664_v25  ;;  %v5449_v35 = vmul.f32 %v5413_v3, %v8312_v8 }
 0x268   : > { %v5481_v44 = vmul.f32 %v5445_v58, %v5445_v58  ;;  %v5482_v16 = vmul.f32 %v5446_v9, %v5446_v9  ;;  %v5483_v40 = vmul.f32 %v5447_v57, %v5447_v57  ;;  %v5416_v39 = vsub.f32 %v8392_v18, %v8664_v25 }
 0x269   : > { %v5450_v43 = vmul.f32 %v5414_v59, %v8316_v10  ;;  %v5484_v1 = vmul.f32 %v5448_v63, %v5448_v63  ;;  %v5417_v31 = vsub.f32 %v8402_v28, %v8664_v25  ;;  %v5451_v4 = vmul.f32 %v5415_v19, %v8318_v11 }
 0x26a   : > { %v5516_v60 = vadd.f32 %v5481_v44, %v5480_v21  ;;  %v5485_v56 = vmul.f32 %v5449_v35, %v5449_v35  ;;  %v5418_v7 = vsub.f32 %v8387_v52, %v8664_v25  ;;  %v5452_v8 = vmul.f32 %v5416_v39, %v8320_v12 }
 0x26b   : > { %v5486_v62 = vmul.f32 %v5450_v43, %v5450_v43  ;;  %v5419_v18 = vsub.f32 %v8397_v24, %v8664_v25  ;;  %v5453_v10 = vmul.f32 %v5417_v31, %v8322_v13  ;;  %v5487_v54 = vmul.f32 %v5451_v4, %v5451_v4 }
 0x26c   : > { %v5517_v34 = vadd.f32 %v5516_v60, %v5482_v16  ;;  %v5420_v28 = vsub.f32 %v8432_v49, %v8664_v25  ;;  %v5454_v11 = vmul.f32 %v5418_v7, %v8327_v14  ;;  %v5488_v9 = vmul.f32 %v5452_v8, %v5452_v8 }
 0x26d   : > { %v5421_v52 = vsub.f32 %v8440_v20, %v8664_v25  ;;  %v5455_v12 = vmul.f32 %v5419_v18, %v8330_v38  ;;  %v5489_v44 = vmul.f32 %v5453_v10, %v5453_v10  ;;  %v5422_v24 = vsub.f32 %v8427_v46, %v8664_v25  ;;  %v8883_v20 = vld [vmem:[#allocation17_spill] sm:$0xff]  ;;  %v8885_v46 = vld [vmem:[#allocation19_spill] sm:$0xff] }
 0x26e   : > { %v5518_v0 = vadd.f32 %v5517_v34, %v5483_v40  ;;  %v5456_v13 = vmul.f32 %v5420_v28, %v8340_v23  ;;  %v5490_v57 = vmul.f32 %v5454_v11, %v5454_v11  ;;  %v5423_v49 = vsub.f32 %v8435_v53, %v8664_v25  ;;  %v8884_v38 = vld [vmem:[#allocation9_spill] sm:$0xff]  ;;  %v8886_v23 = vld [vmem:[#allocation10_spill] sm:$0xff] }
 0x26f   : > { %v5457_v14 = vmul.f32 %v5421_v52, %v8350_v27  ;;  %v5491_v63 = vmul.f32 %v5455_v12, %v5455_v12  ;;  %v5424_v60 = vsub.f32 %v8883_v20, %v8664_v25  ;;  %v5458_v19 = vmul.f32 %v5422_v24, %v8884_v38  ;;  %v8887_v27 = vld [vmem:[#allocation11_spill] sm:$0xff]  ;;  %v8890_v10 = vld [vmem:[#allocation13_spill] sm:$0xff]  ;;  %v8895_v20 = vld [vmem:[#allocation18_spill] sm:$0xff] }
 0x270   : > { %v5519_v33 = vadd.f32 %v5518_v0, %v5484_v1  ;;  %v5492_v35 = vmul.f32 %v5456_v13, %v5456_v13  ;;  %v5425_v34 = vsub.f32 %v8885_v46, %v8664_v25  ;;  %v5459_v39 = vmul.f32 %v5423_v49, %v8886_v23 }
 0x271   : > { %v5493_v43 = vmul.f32 %v5457_v14, %v5457_v14  ;;  %v5426_v53 = vsub.f32 %v8465_v36, %v8664_v25  ;;  %v5460_v0 = vmul.f32 %v5424_v60, %v8887_v27  ;;  %v5494_v31 = vmul.f32 %v5458_v19, %v5458_v19  ;;  %v8891_v36 = vld [vmem:[#allocation23_spill] sm:$0xff] }
 0x272   : > { %v5520_v58 = vadd.f32 %v5519_v33, %v5485_v56  ;;  %v5427_v56 = vsub.f32 %v8475_v61, %v8664_v25  ;;  %v8888_v33 = vld [vmem:[#allocation12_spill] sm:$0xff]  ;;  %v5495_v8 = vmul.f32 %v5459_v39, %v5459_v39  ;;  %v5429_v11 = vsub.f32 %v8891_v36, %v8664_v25  ;;  %v8901_v36 = vld [vmem:[#allocation27_spill] sm:$0xff] }
 0x273   : > { %v5461_v7 = vmul.f32 %v5425_v34, %v8888_v33  ;;  %v5430_v61 = vsub.f32 %v8505_v2, %v8664_v25  ;;  %v5433_v2 = vsub.f32 %v8554_v47, %v8664_v25  ;;  %v8896_v34 = vld [vmem:[#allocation20_spill] sm:$0xff]  ;;  %v5436_v47 = vsub.f32 %v8576_v15, %v8664_v25 }
 0x274   : > { %v5521_v17 = vadd.f32 %v5520_v58, %v5486_v62  ;;  %v8889_v58 = vld [vmem:[#allocation21_spill] sm:$0xff]  ;;  %v5439_v15 = vsub.f32 %v8581_v26, %v8664_v25 }
 0x275   : > { %v5428_v18 = vsub.f32 %v8889_v58, %v8664_v25  ;;  %v5497_v52 = vmul.f32 %v5461_v7, %v5461_v7  ;;  %v5466_v60 = vmul.f32 %v5430_v61, %v8895_v20  ;;  %v5514_v20 = vmul.f32 %v8676_v48, %v8676_v48 }
 0x276   : > { %v5522_v21 = vadd.f32 %v5521_v17, %v5487_v54  ;;  %v5462_v54 = vmul.f32 %v5426_v53, %v8890_v10  ;;  %v5496_v17 = vmul.f32 %v5460_v0, %v5460_v0 }
 0x277   : > { %v5502_v39 = vmul.f32 %v5466_v60, %v5466_v60 }
 0x278   : > { %v5523_v3 = vadd.f32 %v5522_v21, %v5488_v9  ;;  %v8892_v9 = vld [vmem:[#allocation14_spill] sm:$0xff]  ;;  %v5498_v24 = vmul.f32 %v5462_v54, %v5462_v54 }
 0x279   : > { %v5463_v21 = vmul.f32 %v5427_v56, %v8892_v9  ;;  %v8898_v56 = vld [vmem:[#allocation24_spill] sm:$0xff] }
 0x27a   : > { %v5524_v59 = vadd.f32 %v5523_v3, %v5489_v44  ;;  %v8893_v44 = vld [vmem:[#allocation15_spill] sm:$0xff] }
 0x27b   : > { %v5464_v3 = vmul.f32 %v5428_v18, %v8893_v44  ;;  %v5499_v14 = vmul.f32 %v5463_v21, %v5463_v21  ;;  %v8903_v44 = vld [vmem:[#allocation29_spill] sm:$0xff] }
 0x27c   : > { %v5525_v16 = vadd.f32 %v5524_v59, %v5490_v57  ;;  %v5431_v57 = vsub.f32 %v8515_v6, %v8664_v25  ;;  %v8894_v59 = vld [vmem:[#allocation16_spill] sm:$0xff]  ;;  %v5434_v6 = vsub.f32 %v8541_v29, %v8664_v25  ;;  %v5437_v29 = vsub.f32 %v8586_v22, %v8664_v25 }
 0x27d   : > { %v5465_v49 = vmul.f32 %v5429_v11, %v8894_v59  ;;  %v5500_v38 = vmul.f32 %v5464_v3, %v5464_v3  ;;  %v5440_v22 = vsub.f32 %v8606_v41, %v8664_v25 }
 0x27e   : > { %v5526_v40 = vadd.f32 %v5525_v16, %v5491_v63  ;;  %v5432_v16 = vsub.f32 %v8546_v30, %v8664_v25  ;;  %v5435_v30 = vsub.f32 %v8549_v45, %v8664_v25  ;;  %v5438_v45 = vsub.f32 %v8571_v32, %v8664_v25 }
 0x27f   : > { %v5476_v3 = vmul.f32 %v5440_v22, %v8903_v44 }
 0x280   : > { %v5527_v1 = vadd.f32 %v5526_v40, %v5492_v35  ;;  %v5467_v35 = vmul.f32 %v5431_v57, %v8484_v5  ;;  %v5501_v40 = vmul.f32 %v5465_v49, %v5465_v49  ;;  %v5468_v23 = vmul.f32 %v5432_v16, %v8896_v34 }
 0x281   : > { %v5470_v5 = vmul.f32 %v5434_v6, %v8530_v37  ;;  %v5471_v33 = vmul.f32 %v5435_v30, %v8898_v56  ;;  %v8900_v37 = vld [vmem:[#allocation26_spill] sm:$0xff]  ;;  %v5474_v11 = vmul.f32 %v5438_v45, %v8901_v36  ;;  %v5512_v49 = vmul.f32 %v5476_v3, %v5476_v3 }
 0x282   : > { %v5528_v4 = vadd.f32 %v5527_v1, %v5493_v43  ;;  %v8897_v1 = vld [vmem:[#allocation22_spill] sm:$0xff]  ;;  %v5503_v27 = vmul.f32 %v5467_v35, %v5467_v35  ;;  %v5473_v54 = vmul.f32 %v5437_v29, %v8900_v37 }
 0x283   : > { %v5469_v53 = vmul.f32 %v5433_v2, %v8897_v1  ;;  %v5506_v18 = vmul.f32 %v5470_v5, %v5470_v5 }
 0x284   : > { %v5529_v62 = vadd.f32 %v5528_v4, %v5494_v31  ;;  %v5504_v31 = vmul.f32 %v5468_v23, %v5468_v23 }
 0x285   : > { %v5505_v7 = vmul.f32 %v5469_v53, %v5469_v53 }
 0x286   : > { %v5530_v28 = vadd.f32 %v5529_v62, %v5495_v8  ;;  %v8899_v62 = vld [vmem:[#allocation25_spill] sm:$0xff] }
 0x287   : > { %v5472_v58 = vmul.f32 %v5436_v47, %v8899_v62 }
 0x288   : > { %v5531_v12 = vadd.f32 %v5530_v28, %v5496_v17  ;;  %v5507_v17 = vmul.f32 %v5471_v33, %v5471_v33 }
 0x289   : > { %v5508_v9 = vmul.f32 %v5472_v58, %v5472_v58 }
 0x28a   : > { %v5532_v13 = vadd.f32 %v5531_v12, %v5497_v52  ;;  %v8902_v52 = vld [vmem:[#allocation28_spill] sm:$0xff]  ;;  %v5509_v12 = vmul.f32 %v5473_v54, %v5473_v54 }
 0x28b   : > { %v5475_v32 = vmul.f32 %v5439_v15, %v8902_v52 }
 0x28c   : > { %v5533_v63 = vadd.f32 %v5532_v13, %v5498_v24  ;;  %v5510_v24 = vmul.f32 %v5474_v11, %v5474_v11  ;;  %v8904_v13 = vld [vmem:[#allocation30_spill] sm:$0xff] }
 0x28d   : > { %v5477_v57 = vmul.f32 %v5441_v51, %v8904_v13  ;;  %v5511_v59 = vmul.f32 %v5475_v32, %v5475_v32 }
 0x28e   : > { %v5534_v19 = vadd.f32 %v5533_v63, %v5499_v14 }
 0x28f   : > { %v5513_v63 = vmul.f32 %v5477_v57, %v5477_v57 }
 0x290   : > { %v5535_v46 = vadd.f32 %v5534_v19, %v5500_v38  ;;  %v5515_v38 = vmul.f32 %v8678_v50, %v8678_v50 }
 0x292   : > { %v5536_v43 = vadd.f32 %v5535_v46, %v5501_v40 }
 0x294   : > { %v5537_v0 = vadd.f32 %v5536_v43, %v5502_v39 }
 0x296   : > { %v5538_v4 = vadd.f32 %v5537_v0, %v5503_v27 }
 0x298   : > { %v5539_v8 = vadd.f32 %v5538_v4, %v5504_v31 }
 0x29a   : > { %v5540_v10 = vadd.f32 %v5539_v8, %v5505_v7 }
 0x29c   : > { %v5541_v28 = vadd.f32 %v5540_v10, %v5506_v18 }
 0x29e   : > { %v5542_v21 = vadd.f32 %v5541_v28, %v5507_v17 }
 0x2a0   : > { %v5543_v61 = vadd.f32 %v5542_v21, %v5508_v9 }
 0x2a2   : > { %v5544_v26 = vadd.f32 %v5543_v61, %v5509_v12 }
 0x2a4   : > { %v5545_v41 = vadd.f32 %v5544_v26, %v5510_v24 }
 0x2a6   : > { %v5546_v14 = vadd.f32 %v5545_v41, %v5511_v59 }
 0x2a8   : > { %v5547_v16 = vadd.f32 %v5546_v14, %v5512_v49 }
 0x2aa   : > { %v5548_v60 = vadd.f32 %v5547_v16, %v5513_v63 }
 0x2ac   : > { %v5549_v19 = vadd.f32 %v5548_v60, %v5514_v20 }
 0x2ae   : > { %v5550_v2 = vadd.f32 %v5549_v19, %v5515_v38 }
 0x2b0   : > { %v5551_v35 = vrot.slane %v5550_v2, 4 }
 0x2b2   : > { %v5552_v51 = vadd.f32 %v5551_v35, %v5550_v2 }
 0x2b4   : > { %v5553_v25 = vrot.slane %v5552_v51, 2 }
 0x2b6   : > { %v5554_v55 = vadd.f32 %v5553_v25, %v5552_v51 }
 0x2b8   : > { %v5555_v40 = vrot.slane %v5554_v55, 1 }
 0x2ba   : > { %v5556_v46 = vadd.f32 %v5555_v40, %v5554_v55 }
 0x2bc   : > { %v5738_v48 = vsel %vm5737_vm8, %v8661_v42, %v5556_v46 }
 0x2bd   : > { %5739 = vst [vmem:[%s201_s7] sm:$0x3] %v5738_v48 }
 0x2be   : > { %7473 = shalt.err (!%p7470_p9)
}
 0x2bf   : > { %s7474_s13 = scalar_lea.hbm %s8788_s11, 32  ;;  %s7478_s28 = scalar_lea.hbm %s8836_s4, 64 }
 0x2c0   : > { %p7475_p10 = scmp.ne.s32.totalorder %s8788_s11, %s7474_s13  ;;  %p7479_p13 = scmp.lt.u32.totalorder %s8788_s11, %s8836_s4 }
 0x2c1   : > { %p7480_p0 = scmp.lt.u32.totalorder %s7478_s28, %s7474_s13  ;;  %p7482_p2 = scmp.lt.u32.totalorder %s7474_s13, %s8788_s11 }
 0x2c2   : > { %p7476_p11 = pnand %p7475_p10, %p7596_p5 }
 0x2c3   : > { %p7481_p1 = por %p7480_p0, %p7479_p13 }
 0x2c4   : > { %p7477_p12 = pneg %p7476_p11 }
 0x2c5   : > { %p7483_p3 = por %p7482_p2, %p7481_p1 }
 0x2c7   : > { %p7484_p4 = pnand %p7483_p3, %p7477_p12 }
 0x2c9   : > { %7487 = shalt.err (!%p7484_p4)
}
 0x2ca   : > { %7213 = dma.vmem_to_hbm [thread:$0]  (%p7596_p5), %s8790_s8, 32, %s8788_s11, %s5746_s12  }
 0x2cb PF: > { %p7223_p7 = scmp.ge.s32.totalorder %s7526_s18, 2  ;;  %s5787_s30 = sand.u32 1, %s7514_s15  }
 0x2cc   : > { %s5788_s6 = scalar_lea.sflag [#allocation4], %s5787_s30 }
 0x2cd   : > { %p7217_p8 = pnand %p7223_p7, %p7600_p6 }
 0x2cf   : > { %7505 = dma.done.wait (!%p7217_p8), %s5788_s6, 2304  }
 0x2d0   : > { %7507 = vsyncadd (!%p7217_p8), %s5788_s6, 4294964992  ;;  %s5797_s7 = scalar_lea.sflag [#allocation6], %s5787_s30 }
 0x2d1   : > { %7509 = dma.done.wait (!%p7217_p8), %s5797_s7, 32  }
 0x2d2   : > { %7511 = vsyncadd (!%p7217_p8), %s5797_s7, 4294967264  ;;  %p18_p5 = scmp.ge.s32.totalorder %s7583_s21, 4   ;;  %s8905_s15 = smov %s7518_s16 }
 0x2d3   : > { %s8906_s16 = smov %s7522_s17  ;;  %s8907_s17 = smov %s7594_s24 }
 0x2d4   : > { %s8908_s18 = smov %s7583_s21  ;;  %20 = sbr.rel (!%p18_p5) target bundleno = 5 (0x5), region = 92 }
 0x2db   :  { %5802 = vsyncpa [#allocation4], 1 }
 0x2dc   :  { %5804 = vsyncpa [#allocation4 + $0x1], 1 }
 0x2dd   :  { %5805 = vsyncpa [#allocation6], 1 }
 0x2de   :  { %5807 = vsyncpa [#allocation6 + $0x1], 1 }

</bundles_post_ra>
